<compile_context>
chip_gen: v6e
topology: v6e:2x2x1
jax: 0.10.0
libtpu: 0.0.40
codegen_flags: <defaults>
</compile_context>

<pallas_src>
import functools
import math

import jax
import jax.numpy as jnp
import numpy as np
from jax.experimental import pallas as pl
from jax.experimental.pallas import tpu as pltpu


def _round_up(x, m):
    return ((x + m - 1) // m) * m


# --------------------------------------------------------------------------- #
# Fused multi-layer GIN kernel
# --------------------------------------------------------------------------- #
def _fused_gin_kernel(eps_ref, x_ref, adj_ref, w1_ref, c1_ref, w2_ref, c2_ref,
                      out_ref, h_ref, hrelu_ref, *, tm, n_pad):
    """Grid = (num_layers, num_row_tiles); last axis iterates fastest.

    adj / x / out have constant block indices (single-buffered, DMA'd once).
    Per-layer folded weights re-fetch only when the layer index changes.
    Node activations (f32) and their bf16 relu copies each ping-pong between
    the two n_pad-row halves of their scratch buffers.
    """
    l = pl.program_id(0)
    i = pl.program_id(1)
    n_layers = pl.num_programs(0)

    row = pl.multiple_of(i * tm, tm)
    in_off = pl.multiple_of((l % 2) * n_pad, tm)          # layer-l input slot
    out_off = pl.multiple_of(((l + 1) % 2) * n_pad, tm)   # layer-l output slot

    # ---- layer 0, tile 0: seed both scratches from the input features.
    #      f32 copy goes through the DMA engine (no vld/vst pressure); the bf16
    #      relu(x) aggregation operand is computed once here.
    @pl.when(jnp.logical_and(l == 0, i == 0))
    def _():
        pltpu.sync_copy(x_ref, h_ref.at[pl.ds(0, n_pad), :])
        hrelu_ref[pl.ds(0, n_pad), :] = jnp.maximum(
            x_ref[...], 0.0).astype(hrelu_ref.dtype)

    # ---- neighbor aggregation for this row tile: A[rows, :] @ relu(H_l)
    #      bf16 x bf16 operands, f32 MXU accumulation.
    adj_rows = adj_ref[pl.ds(row, tm), :]                           # (tm, n_pad) bf16
    agg = jnp.dot(adj_rows, hrelu_ref[pl.ds(in_off, n_pad), :],
                  preferred_element_type=jnp.float32)               # (tm, D) f32

    # ---- GIN update + MLP (BN affines folded into W/c on the host).
    #      MLP matmuls: bf16 operands, f32 accumulation.
    src = pl.multiple_of(in_off + row, tm)
    h_in = h_ref[pl.ds(src, tm), :]                                 # (tm, D) f32
    z = (1.0 + eps_ref[l]) * h_in + agg
    t = jnp.maximum(
        jnp.dot(z.astype(jnp.bfloat16), w1_ref[0],
                preferred_element_type=jnp.float32) + c1_ref[0],
        0.0)
    m = jnp.dot(t.astype(jnp.bfloat16), w2_ref[0],
                preferred_element_type=jnp.float32) + c2_ref[0]

    # ---- intermediate layers: relu, keep f32 in scratch AND write the bf16
    #      relu copy (already non-negative -> plain cast) for the next layer's
    #      aggregation, distributed per row tile (hidden under MXU work).
    @pl.when(l < n_layers - 1)
    def _():
        dst = pl.multiple_of(out_off + row, tm)
        h_next = jnp.maximum(m, 0.0)
        h_ref[pl.ds(dst, tm), :] = h_next
        hrelu_ref[pl.ds(dst, tm), :] = h_next.astype(hrelu_ref.dtype)

    # ---- last layer: write the output (no relu / dropout on the last layer).
    @pl.when(l == n_layers - 1)
    def _():
        out_ref[pl.ds(row, tm), :] = m


# --------------------------------------------------------------------------- #
# Host-side parameter folding (BN affine -> weights/bias), stacking, padding
# --------------------------------------------------------------------------- #
def _fold_and_stack_params(params, d, d_pad):
    eps_l, w1_l, c1_l, w2_l, c2_l = [], [], [], [], []
    for p in params:
        # BN(y) = y * s + t  folded into the preceding Linear:
        #   y = x @ W^T + b  ->  x @ (W^T * s) + (b * s + t)
        w1f = p["w1"].T * p["bn1_scale"][None, :]
        c1 = p["b1"] * p["bn1_scale"] + p["bn1_shift"]
        w2f = p["w2"].T * p["bn2_scale"][None, :]
        c2 = p["b2"] * p["bn2_scale"] + p["bn2_shift"]
        # zero-pad to lane-aligned feature dim; weights stored bf16 (MXU operand
        # dtype), biases stay f32 (added after the f32-accumulated dot).
        w1_l.append(jnp.zeros((d_pad, d_pad), jnp.float32)
                    .at[:d, :d].set(w1f).astype(jnp.bfloat16))
        w2_l.append(jnp.zeros((d_pad, d_pad), jnp.float32)
                    .at[:d, :d].set(w2f).astype(jnp.bfloat16))
        c1_l.append(jnp.zeros((1, d_pad), jnp.float32).at[0, :d].set(c1))
        c2_l.append(jnp.zeros((1, d_pad), jnp.float32).at[0, :d].set(c2))
        eps_l.append(jnp.asarray(p["eps"], jnp.float32))
    return (jnp.stack(eps_l), jnp.stack(w1_l), jnp.stack(c1_l),
            jnp.stack(w2_l), jnp.stack(c2_l))


# --------------------------------------------------------------------------- #
# Wrapper
# --------------------------------------------------------------------------- #
def gnn_node_forward(adj, x, params, *, row_tile=256):
    """GNN_node.forward (gin, JK='last', residual=False), eval mode.

    row_tile: 256 is MXU-shaped for v6e/v7x (2x256^2); use 128 on v5e.
    """
    N, D = x.shape
    L = len(params)
    assert adj.shape == (N, N)
    assert L >= 2, "Number of GNN layers must be greater than 1."

    d_pad = _round_up(D, 128)                              # lane-dense features
    tm = _round_up(min(row_tile, _round_up(N, 8)), 8)      # row tile (mult of 8)
    n_pad = _round_up(N, tm)

    # Pad once on the host; adjacency is 0/1 -> exact in bf16.
    adj_p = jnp.zeros((n_pad, n_pad), jnp.float32).at[:N, :N].set(adj)
    adj_p = adj_p.astype(jnp.bfloat16)
    x_p = jnp.zeros((n_pad, d_pad), jnp.float32).at[:N, :D].set(x)

    eps, w1f, c1, w2f, c2 = _fold_and_stack_params(params, D, d_pad)

    kernel = functools.partial(_fused_gin_kernel, tm=tm, n_pad=n_pad)

    def resident(shape):                       # VMEM-resident, DMA'd once, 1 buffer
        return pl.BlockSpec(shape, lambda l, i: (0,) * len(shape),
                            pipeline_mode=pl.Buffered(1))

    def per_layer(shape):                      # re-fetched only on layer change
        return pl.BlockSpec(shape, lambda l, i: (l,) + (0,) * (len(shape) - 1),
                            pipeline_mode=pl.Buffered(2))

    # ---- Per-generation VMEM budget (80% of physical leaves compiler headroom).
    try:
        vmem_cap = int(pltpu.get_tpu_info().vmem_capacity_bytes)
    except Exception:
        vmem_cap = 64 << 20            # conservative: v7x per-TensorCore VMEM
    vmem_budget = int(0.8 * vmem_cap)

    vmem_est = (n_pad * n_pad * 2                       # adjacency bf16 (1 buffer)
                + 2 * n_pad * d_pad * 4                 # x + out f32 (1 buffer each)
                + 2 * 2 * (d_pad * d_pad * 2 + d_pad * 4)  # W bf16 + c f32, 2 buffers
                + 2 * n_pad * d_pad * 4                 # h ping-pong f32 scratch
                + 2 * n_pad * d_pad * 2)                # relu(h) ping-pong bf16

    if vmem_est + (2 << 20) > vmem_budget:
        # TODO(synk): column-tile the adjacency (accumulate agg over source-node
        # panels on a third grid axis) instead of failing for large graphs.
        raise ValueError(
            f"Graph too large for the all-resident fused GIN kernel: needs "
            f"~{vmem_est >> 20} MiB VMEM, budget {vmem_budget >> 20} MiB.")

    vmem_limit = int(min(max(vmem_est + (8 << 20), 32 << 20), vmem_budget))

    out = pl.pallas_call(
        kernel,
        out_shape=jax.ShapeDtypeStruct((n_pad, d_pad), jnp.float32),
        grid=(L, n_pad // tm),
        in_specs=[
            pl.BlockSpec(memory_space=pltpu.SMEM),     # eps, shape (L,)
            resident((n_pad, d_pad)),                  # x      (resident, f32)
            resident((n_pad, n_pad)),                  # adj    (resident, bf16)
            per_layer((1, d_pad, d_pad)),              # folded W1^T (bf16) per layer
            per_layer((1, 1, d_pad)),                  # folded bias/shift 1 (f32)
            per_layer((1, d_pad, d_pad)),              # folded W2^T (bf16) per layer
            per_layer((1, 1, d_pad)),                  # folded bias/shift 2 (f32)
        ],
        out_specs=resident((n_pad, d_pad)),            # written back once
        scratch_shapes=[
            pltpu.VMEM((2 * n_pad, d_pad), jnp.float32),   # ping-pong activations
            pltpu.VMEM((2 * n_pad, d_pad), jnp.bfloat16),  # ping-pong relu(h) (bf16)
        ],
        compiler_params=pltpu.CompilerParams(
            # Both axes carry state through the VMEM scratch -> sequential.
            # TODO(synk): v7x second TensorCore is idle with this structure.
            dimension_semantics=("arbitrary", "arbitrary"),
            vmem_limit_bytes=vmem_limit,
        ),
    )(eps, x_p, adj_p, w1f, c1, w2f, c2)

    return out[:N, :D]


# --------------------------------------------------------------------------- #
# Deterministic PyTorch-style parameter construction
# --------------------------------------------------------------------------- #
def _linear_init(key, in_dim, out_dim):
    # torch.nn.Linear default: U(-1/sqrt(in), 1/sqrt(in)) for weight and bias
    kw, kb = jax.random.split(key)
    bound = 1.0 / math.sqrt(in_dim)
    w = jax.random.uniform(kw, (out_dim, in_dim), jnp.float32, -bound, bound)
    b = jax.random.uniform(kb, (out_dim,), jnp.float32, -bound, bound)
    return w, b


def _bn_affine(emb_dim, bn_eps=1e-5):
    # PyTorch BatchNorm1d eval defaults: gamma=1, beta=0, mean=0, var=1
    gamma = jnp.ones((emb_dim,), jnp.float32)
    beta = jnp.zeros((emb_dim,), jnp.float32)
    rmean = jnp.zeros((emb_dim,), jnp.float32)
    rvar = jnp.ones((emb_dim,), jnp.float32)
    scale = gamma / jnp.sqrt(rvar + bn_eps)
    shift = beta - rmean * scale
    return scale, shift


def make_params(key, num_layers, emb_dim):
    params = []
    for _ in range(num_layers):
        k1, k2, key = jax.random.split(key, 3)
        w1, b1 = _linear_init(k1, emb_dim, emb_dim)
        w2, b2 = _linear_init(k2, emb_dim, emb_dim)
        s1, t1 = _bn_affine(emb_dim)   # BN inside GINConv.mlp
        s2, t2 = _bn_affine(emb_dim)   # GNN_node.batch_norms[layer]
        params.append(dict(
            eps=jnp.float32(0.0),      # GINConv.eps init: torch.Tensor([0])
            w1=w1, b1=b1, bn1_scale=s1, bn1_shift=t1,
            w2=w2, b2=b2, bn2_scale=s2, bn2_shift=t2,
        ))
    return params


# --------------------------------------------------------------------------- #
# Pure-JAX reference (mirrors the kernel's bf16 operand / f32 accumulate dots)
# --------------------------------------------------------------------------- #
def _reference(adj, x, params):
    h = x
    L = len(params)
    adj_b = adj.astype(jnp.bfloat16)
    for layer, p in enumerate(params):
        agg = jnp.dot(adj_b, jnp.maximum(h, 0.0).astype(jnp.bfloat16),
                      preferred_element_type=jnp.float32)
        z = (1.0 + p["eps"]) * h + agg
        w1f = (p["w1"].T * p["bn1_scale"][None, :]).astype(jnp.bfloat16)
        c1 = p["b1"] * p["bn1_scale"] + p["bn1_shift"]
        t = jnp.maximum(
            jnp.dot(z.astype(jnp.bfloat16), w1f,
                    preferred_element_type=jnp.float32) + c1, 0.0)
        w2f = (p["w2"].T * p["bn2_scale"][None, :]).astype(jnp.bfloat16)
        c2 = p["b2"] * p["bn2_scale"] + p["bn2_shift"]
        h = jnp.dot(t.astype(jnp.bfloat16), w2f,
                    preferred_element_type=jnp.float32) + c2
        if layer != L - 1:
            h = jnp.maximum(h, 0.0)
    return h


if __name__ == "__main__":
    num_layers = 3
    emb_dim = 128        # lane-aligned feature dim
    num_nodes = 200      # deliberately not a multiple of the row tile (tests padding)

    key = jax.random.PRNGKey(0)
    k_adj, k_x, k_par = jax.random.split(key, 3)

    # dense adjacency: A[dst, src] = 1 if edge src -> dst
    adj = jax.random.bernoulli(k_adj, 0.1, (num_nodes, num_nodes)).astype(jnp.float32)
    x = jax.random.normal(k_x, (num_nodes, emb_dim), jnp.float32)
    params = make_params(k_par, num_layers, emb_dim)

    out = jax.block_until_ready(gnn_node_forward(adj, x, params))

    ref = _reference(adj, x, params)
    np.testing.assert_allclose(np.asarray(out), np.asarray(ref), rtol=5e-3, atol=5e-3)

    print("KERNEL_OK")
</pallas_src>

<mosaic_0001>
module attributes {stable_mosaic.version = 11 : i64} {
  func.func @_fused_gin_kernel(%arg0: i32, %arg1: i32, %arg2: memref<3xf32, #tpu.memory_space<smem>>, %arg3: memref<200x128xf32, #tpu.memory_space<vmem>>, %arg4: memref<200x200xbf16, #tpu.memory_space<vmem>>, %arg5: memref<1x128x128xbf16, #tpu.memory_space<vmem>>, %arg6: memref<1x1x128xf32, #tpu.memory_space<vmem>>, %arg7: memref<1x128x128xbf16, #tpu.memory_space<vmem>>, %arg8: memref<1x1x128xf32, #tpu.memory_space<vmem>>, %arg9: memref<200x128xf32, #tpu.memory_space<vmem>>, %arg10: memref<400x128xf32, #tpu.memory_space<vmem>>, %arg11: memref<400x128xbf16, #tpu.memory_space<vmem>>) attributes {dimension_semantics = [#tpu.dimension_semantics<arbitrary>, #tpu.dimension_semantics<arbitrary>], iteration_bounds = array<i64: 3, 1>, scalar_prefetch = 0 : i64, scratch_operands = 2 : i64, tpu.core_type = #tpu.core_type<tc>, window_params = [{transform_indices = @transform_0, window_bounds = array<i64: 3>}, {pipeline_mode = #tpu.pipeline_mode<synchronous>, transform_indices = @transform_1, window_bounds = array<i64: 200, 128>}, {pipeline_mode = #tpu.pipeline_mode<synchronous>, transform_indices = @transform_2, window_bounds = array<i64: 200, 200>}, {pipeline_mode = #tpu.pipeline_mode<double_buffered>, transform_indices = @transform_3, window_bounds = array<i64: 1, 128, 128>}, {pipeline_mode = #tpu.pipeline_mode<double_buffered>, transform_indices = @transform_4, window_bounds = array<i64: 1, 1, 128>}, {pipeline_mode = #tpu.pipeline_mode<double_buffered>, transform_indices = @transform_5, window_bounds = array<i64: 1, 128, 128>}, {pipeline_mode = #tpu.pipeline_mode<double_buffered>, transform_indices = @transform_6, window_bounds = array<i64: 1, 1, 128>}, {pipeline_mode = #tpu.pipeline_mode<synchronous>, transform_indices = @transform_7, window_bounds = array<i64: 200, 128>}]} {
    %c200_i32 = arith.constant 200 : i32
    %0 = arith.muli %arg1, %c200_i32 : i32
    %1 = tpu.assume_multiple %0, 200 : i32
    %c2_i32 = arith.constant 2 : i32
    %c0_i32 = arith.constant 0 : i32
    %2 = arith.cmpi eq, %c2_i32, %c0_i32 : i32
    %c1_i32 = arith.constant 1 : i32
    %3 = arith.select %2, %c1_i32, %c2_i32 : i32
    %4 = arith.remsi %arg0, %3 : i32
    %c0_i32_0 = arith.constant 0 : i32
    %5 = arith.cmpi ne, %4, %c0_i32_0 : i32
    %c0_i32_1 = arith.constant 0 : i32
    %6 = arith.cmpi slt, %4, %c0_i32_1 : i32
    %c0_i32_2 = arith.constant 0 : i32
    %7 = arith.cmpi slt, %3, %c0_i32_2 : i32
    %8 = arith.xori %6, %7 : i1
    %9 = arith.andi %8, %5 : i1
    %10 = arith.addi %4, %3 : i32
    %11 = arith.select %9, %10, %4 : i32
    %c200_i32_3 = arith.constant 200 : i32
    %12 = arith.muli %11, %c200_i32_3 : i32
    %13 = tpu.assume_multiple %12, 200 : i32
    %c1_i32_4 = arith.constant 1 : i32
    %14 = arith.addi %arg0, %c1_i32_4 : i32
    %c2_i32_5 = arith.constant 2 : i32
    %c0_i32_6 = arith.constant 0 : i32
    %15 = arith.cmpi eq, %c2_i32_5, %c0_i32_6 : i32
    %c1_i32_7 = arith.constant 1 : i32
    %16 = arith.select %15, %c1_i32_7, %c2_i32_5 : i32
    %17 = arith.remsi %14, %16 : i32
    %c0_i32_8 = arith.constant 0 : i32
    %18 = arith.cmpi ne, %17, %c0_i32_8 : i32
    %c0_i32_9 = arith.constant 0 : i32
    %19 = arith.cmpi slt, %17, %c0_i32_9 : i32
    %c0_i32_10 = arith.constant 0 : i32
    %20 = arith.cmpi slt, %16, %c0_i32_10 : i32
    %21 = arith.xori %19, %20 : i1
    %22 = arith.andi %21, %18 : i1
    %23 = arith.addi %17, %16 : i32
    %24 = arith.select %22, %23, %17 : i32
    %c200_i32_11 = arith.constant 200 : i32
    %25 = arith.muli %24, %c200_i32_11 : i32
    %26 = tpu.assume_multiple %25, 200 : i32
    %c0_i32_12 = arith.constant 0 : i32
    %27 = arith.cmpi eq, %arg0, %c0_i32_12 : i32
    %c0_i32_13 = arith.constant 0 : i32
    %28 = arith.cmpi eq, %arg1, %c0_i32_13 : i32
    %29 = arith.andi %27, %28 : i1
    %30 = arith.extui %29 : i1 to i32
    %c0_i32_14 = arith.constant 0 : i32
    %31 = arith.cmpi ne, %30, %c0_i32_14 : i32
    scf.if %31 {
      "tpu.region"() ({
        %76 = tpu.sem_alloc : memref<!tpu.dma_semaphore, #tpu.memory_space<semaphore_mem>>
        %c0_i32_42 = arith.constant 0 : i32
        %c0_i32_43 = arith.constant 0 : i32
        %77 = tpu.memref_slice %arg10[%c0_i32_42, %c0_i32_43] : memref<400x128xf32, #tpu.memory_space<vmem>> -> memref<200x128xf32, #tpu.memory_space<vmem>>
        tpu.enqueue_dma source(%arg3 : memref<200x128xf32, #tpu.memory_space<vmem>>) target(%77 : memref<200x128xf32, #tpu.memory_space<vmem>>) target_semaphore(%76 : memref<!tpu.dma_semaphore, #tpu.memory_space<semaphore_mem>>)
        %c0_i32_44 = arith.constant 0 : i32
        %c0_i32_45 = arith.constant 0 : i32
        %78 = tpu.memref_slice %arg10[%c0_i32_44, %c0_i32_45] : memref<400x128xf32, #tpu.memory_space<vmem>> -> memref<200x128xf32, #tpu.memory_space<vmem>>
        tpu.wait_dma2 semaphore(%76 : memref<!tpu.dma_semaphore, #tpu.memory_space<semaphore_mem>>) src(%arg3 : memref<200x128xf32, #tpu.memory_space<vmem>>) dst(%78 : memref<200x128xf32, #tpu.memory_space<vmem>>)
        tpu.yield
      }) : () -> ()
      %c0_37 = arith.constant 0 : index
      %c0_38 = arith.constant 0 : index
      %71 = vector.load %arg3[%c0_37, %c0_38] : memref<200x128xf32, #tpu.memory_space<vmem>>, vector<200x128xf32>
      %cst_39 = arith.constant 0.000000e+00 : f32
      %72 = vector.broadcast %cst_39 : f32 to vector<200x128xf32>
      %73 = arith.maximumf %71, %72 : vector<200x128xf32>
      %74 = arith.truncf %73 : vector<200x128xf32> to vector<200x128xbf16>
      %c0_40 = arith.constant 0 : index
      %c0_41 = arith.constant 0 : index
      %75 = vector.load %arg11[%c0_40, %c0_41] : memref<400x128xbf16, #tpu.memory_space<vmem>>, vector<200x128xbf16>
      tpu.vector_store %arg11[%c0_40, %c0_41], %74 {strides = array<i32>} : memref<400x128xbf16, #tpu.memory_space<vmem>>, vector<200x128xbf16>,
    } else {
    }
    %32 = arith.index_cast %1 : i32 to index
    %c0 = arith.constant 0 : index
    %33 = vector.load %arg4[%32, %c0] : memref<200x200xbf16, #tpu.memory_space<vmem>>, vector<200x200xbf16>
    %34 = arith.index_cast %13 : i32 to index
    %c0_15 = arith.constant 0 : index
    %35 = vector.load %arg11[%34, %c0_15] : memref<400x128xbf16, #tpu.memory_space<vmem>>, vector<200x128xbf16>
    %cst = arith.constant dense<0.000000e+00> : vector<200x128xf32>
    %36 = tpu.matmul %33, %35, %cst {dimension_numbers = #tpu.dot_dimension_numbers<[1], [0], [0], [1], [0, 0, 1, 1], [], []>} : vector<200x200xbf16>, vector<200x128xbf16>, vector<200x128xf32> -> vector<200x128xf32>
    %37 = arith.addi %13, %1 : i32
    %38 = tpu.assume_multiple %37, 200 : i32
    %39 = arith.index_cast %38 : i32 to index
    %c0_16 = arith.constant 0 : index
    %40 = vector.load %arg10[%39, %c0_16] : memref<400x128xf32, #tpu.memory_space<vmem>>, vector<200x128xf32>
    %41 = arith.index_cast %arg0 : i32 to index
    %42 = memref.load %arg2[%41] : memref<3xf32, #tpu.memory_space<smem>>
    %cst_17 = arith.constant 1.000000e+00 : f32
    %43 = arith.addf %cst_17, %42 : f32
    %44 = vector.broadcast %43 : f32 to vector<200x128xf32>
    %45 = arith.mulf %44, %40 : vector<200x128xf32>
    %46 = arith.addf %45, %36 : vector<200x128xf32>
    %47 = arith.truncf %46 : vector<200x128xf32> to vector<200x128xbf16>
    %c0_18 = arith.constant 0 : index
    %c0_19 = arith.constant 0 : index
    %c0_20 = arith.constant 0 : index
    %48 = vector.load %arg5[%c0_18, %c0_19, %c0_20] : memref<1x128x128xbf16, #tpu.memory_space<vmem>>, vector<1x128x128xbf16>
    %49 = vector.shape_cast %48 : vector<1x128x128xbf16> to vector<128x128xbf16>
    %cst_21 = arith.constant dense<0.000000e+00> : vector<200x128xf32>
    %50 = tpu.matmul %47, %49, %cst_21 {dimension_numbers = #tpu.dot_dimension_numbers<[1], [0], [0], [1], [0, 0, 1, 1], [], []>} : vector<200x128xbf16>, vector<128x128xbf16>, vector<200x128xf32> -> vector<200x128xf32>
    %c0_22 = arith.constant 0 : index
    %c0_23 = arith.constant 0 : index
    %c0_24 = arith.constant 0 : index
    %51 = vector.load %arg6[%c0_22, %c0_23, %c0_24] : memref<1x1x128xf32, #tpu.memory_space<vmem>>, vector<1x1x128xf32>
    %52 = vector.shape_cast %51 : vector<1x1x128xf32> to vector<1x128xf32>
    %53 = vector.broadcast %52 : vector<1x128xf32> to vector<200x128xf32>
    %54 = arith.addf %50, %53 : vector<200x128xf32>
    %cst_25 = arith.constant 0.000000e+00 : f32
    %55 = vector.broadcast %cst_25 : f32 to vector<200x128xf32>
    %56 = arith.maximumf %54, %55 : vector<200x128xf32>
    %57 = arith.truncf %56 : vector<200x128xf32> to vector<200x128xbf16>
    %c0_26 = arith.constant 0 : index
    %c0_27 = arith.constant 0 : index
    %c0_28 = arith.constant 0 : index
    %58 = vector.load %arg7[%c0_26, %c0_27, %c0_28] : memref<1x128x128xbf16, #tpu.memory_space<vmem>>, vector<1x128x128xbf16>
    %59 = vector.shape_cast %58 : vector<1x128x128xbf16> to vector<128x128xbf16>
    %cst_29 = arith.constant dense<0.000000e+00> : vector<200x128xf32>
    %60 = tpu.matmul %57, %59, %cst_29 {dimension_numbers = #tpu.dot_dimension_numbers<[1], [0], [0], [1], [0, 0, 1, 1], [], []>} : vector<200x128xbf16>, vector<128x128xbf16>, vector<200x128xf32> -> vector<200x128xf32>
    %c0_30 = arith.constant 0 : index
    %c0_31 = arith.constant 0 : index
    %c0_32 = arith.constant 0 : index
    %61 = vector.load %arg8[%c0_30, %c0_31, %c0_32] : memref<1x1x128xf32, #tpu.memory_space<vmem>>, vector<1x1x128xf32>
    %62 = vector.shape_cast %61 : vector<1x1x128xf32> to vector<1x128xf32>
    %63 = vector.broadcast %62 : vector<1x128xf32> to vector<200x128xf32>
    %64 = arith.addf %60, %63 : vector<200x128xf32>
    %c2_i32_33 = arith.constant 2 : i32
    %65 = arith.cmpi slt, %arg0, %c2_i32_33 : i32
    %66 = arith.extui %65 : i1 to i32
    %c0_i32_34 = arith.constant 0 : i32
    %67 = arith.cmpi ne, %66, %c0_i32_34 : i32
    scf.if %67 {
      %71 = arith.addi %26, %1 : i32
      %72 = tpu.assume_multiple %71, 200 : i32
      %cst_37 = arith.constant 0.000000e+00 : f32
      %73 = vector.broadcast %cst_37 : f32 to vector<200x128xf32>
      %74 = arith.maximumf %64, %73 : vector<200x128xf32>
      %75 = arith.index_cast %72 : i32 to index
      %c0_38 = arith.constant 0 : index
      %76 = vector.load %arg10[%75, %c0_38] : memref<400x128xf32, #tpu.memory_space<vmem>>, vector<200x128xf32>
      tpu.vector_store %arg10[%75, %c0_38], %74 {strides = array<i32>} : memref<400x128xf32, #tpu.memory_space<vmem>>, vector<200x128xf32>,
      %77 = arith.truncf %74 : vector<200x128xf32> to vector<200x128xbf16>
      %78 = arith.index_cast %72 : i32 to index
      %c0_39 = arith.constant 0 : index
      %79 = vector.load %arg11[%78, %c0_39] : memref<400x128xbf16, #tpu.memory_space<vmem>>, vector<200x128xbf16>
      tpu.vector_store %arg11[%78, %c0_39], %77 {strides = array<i32>} : memref<400x128xbf16, #tpu.memory_space<vmem>>, vector<200x128xbf16>,
    } else {
    }
    %c2_i32_35 = arith.constant 2 : i32
    %68 = arith.cmpi eq, %arg0, %c2_i32_35 : i32
    %69 = arith.extui %68 : i1 to i32
    %c0_i32_36 = arith.constant 0 : i32
    %70 = arith.cmpi ne, %69, %c0_i32_36 : i32
    scf.if %70 {
      %71 = arith.index_cast %1 : i32 to index
      %c0_37 = arith.constant 0 : index
      %72 = vector.load %arg9[%71, %c0_37] : memref<200x128xf32, #tpu.memory_space<vmem>>, vector<200x128xf32>
      tpu.vector_store %arg9[%71, %c0_37], %64 {strides = array<i32>} : memref<200x128xf32, #tpu.memory_space<vmem>>, vector<200x128xf32>,
    } else {
    }
    return
  }
  func.func @transform_0(%arg0: i32, %arg1: i32) -> i32 {
    %c0_i32 = arith.constant 0 : i32
    %c0_i32_0 = arith.constant 0 : i32
    return %c0_i32 : i32
  }
  func.func @transform_1(%arg0: i32, %arg1: i32) -> (i32, i32) {
    %c0_i32 = arith.constant 0 : i32
    %c0_i32_0 = arith.constant 0 : i32
    %c0_i32_1 = arith.constant 0 : i32
    return %c0_i32, %c0_i32_0 : i32, i32
  }
  func.func @transform_2(%arg0: i32, %arg1: i32) -> (i32, i32) {
    %c0_i32 = arith.constant 0 : i32
    %c0_i32_0 = arith.constant 0 : i32
    %c0_i32_1 = arith.constant 0 : i32
    return %c0_i32, %c0_i32_0 : i32, i32
  }
  func.func @transform_3(%arg0: i32, %arg1: i32) -> (i32, i32, i32) {
    %c0_i32 = arith.constant 0 : i32
    %c0_i32_0 = arith.constant 0 : i32
    %c0_i32_1 = arith.constant 0 : i32
    return %arg0, %c0_i32, %c0_i32_0 : i32, i32, i32
  }
  func.func @transform_4(%arg0: i32, %arg1: i32) -> (i32, i32, i32) {
    %c0_i32 = arith.constant 0 : i32
    %c0_i32_0 = arith.constant 0 : i32
    %c0_i32_1 = arith.constant 0 : i32
    return %arg0, %c0_i32, %c0_i32_0 : i32, i32, i32
  }
  func.func @transform_5(%arg0: i32, %arg1: i32) -> (i32, i32, i32) {
    %c0_i32 = arith.constant 0 : i32
    %c0_i32_0 = arith.constant 0 : i32
    %c0_i32_1 = arith.constant 0 : i32
    return %arg0, %c0_i32, %c0_i32_0 : i32, i32, i32
  }
  func.func @transform_6(%arg0: i32, %arg1: i32) -> (i32, i32, i32) {
    %c0_i32 = arith.constant 0 : i32
    %c0_i32_0 = arith.constant 0 : i32
    %c0_i32_1 = arith.constant 0 : i32
    return %arg0, %c0_i32, %c0_i32_0 : i32, i32, i32
  }
  func.func @transform_7(%arg0: i32, %arg1: i32) -> (i32, i32) {
    %c0_i32 = arith.constant 0 : i32
    %c0_i32_0 = arith.constant 0 : i32
    %c0_i32_1 = arith.constant 0 : i32
    return %c0_i32, %c0_i32_0 : i32, i32
  }
}

</mosaic_0001>

<bundles_post_ra>
// kernel: tpu_custom_call.1
= control target key start
LH: loop header
LB: loop body
LE: loop exit
PB: predicated region body
PF: predicated region fallthrough
CT: control target
= control target key end

     0   :  { %s3638_s0 = inlined_call_operand.hbm [shape: f32[3], index: 0, kind: input, shape index: {}]   ;;  %s3639_s1 = inlined_call_operand.hbm [shape: f32[200,128], index: 1, kind: input, shape index: {}]   ;;  %s3640_s2 = inlined_call_operand.hbm [shape: bf16[200,200], index: 2, kind: input, shape index: {}]   ;;  %s3641_s3 = inlined_call_operand.hbm [shape: bf16[3,128,128], index: 3, kind: input, shape index: {}]   ;;  %s3642_s4 = inlined_call_operand.vmem [shape: f32[3,1,128], index: 4, kind: input, shape index: {}]   ;;  %s3643_s5 = inlined_call_operand.hbm [shape: bf16[3,128,128], index: 5, kind: input, shape index: {}]   ;;  %s3644_s6 = inlined_call_operand.vmem [shape: f32[3,1,128], index: 6, kind: input, shape index: {}]   ;;  %s3645_s7 = inlined_call_operand.hbm [shape: f32[200,128], index: 7, kind: output, shape index: {}]  }
   0x1   :  { %3652 = sst [smem:[#allocation26_spill]] %s3639_s1 }
   0x2   :  { %3653 = sst [smem:[#allocation27_spill]] %s3641_s3 }
   0x3   :  { %3654 = sst [smem:[#allocation28_spill]] %s3645_s7 }
   0x4   :  { %12 = vsyncpa [#allocation7], 0 }
   0x5   :  { %13 = vsyncpa [#allocation5], 0 }
   0x6   :  { %14 = vsyncpa [#allocation10], 0 }
   0x7   :  { %15 = vsyncpa [#allocation6], 0  ;;  %s3040_s24 = smov 0   ;;  %s3042_s25 = smov 0  }
   0x8   :  { %s3044_s26 = smov 0   ;;  %s3046_s27 = smov 0  }
   0x9   :  { %s3048_s28 = smov 0   ;;  %s3050_s29 = smov 0  }
   0xa LB: > { %3655 = sst [smem:[#allocation22_spill]] %s2971_s26  ;;  %s3069_s30 = sadd.s32 4294967295, %s2983_s29   ;;  %s2983_s29 = sphi %s3050_s29, %s21_s29   ;;  %s2979_s28 = sphi %s3048_s28, %s3678_s28   ;;  %s2975_s27 = sphi %s3046_s27, %s3677_s27   ;;  %s2971_s26 = sphi %s3044_s26, %s3676_s26   ;;  %s2967_s25 = sphi %s3042_s25, %s3680_s25   ;;  %s2963_s24 = sphi %s3040_s24, %s3679_s24  }
   0xb   : > { %3656 = sst [smem:[#allocation23_spill]] %s2979_s28  ;;  %p110_p0 = scmp.ne.s32.totalorder %s2971_s26, %s2967_s25 }
   0xc   : > { %p111_p1 = scmp.eq.s32.totalorder %s2983_s29, 0  ;;  %p116_p2 = scmp.ne.s32.totalorder %s2967_s25, %s2963_s24 }
   0xd   : > { %p3646_p3 = scmp.eq.s32.totalorder %s3069_s30, 0  ;;  %p2057_p5 = scmp.ge.s32.totalorder %s2983_s29, 1 }
   0xe   : > { %p112_p4 = por %p111_p1, %p110_p0  ;;  %p226_p7 = scmp.lt.s32.totalorder %s2983_s29, 4 }
   0xf   : > { %p3080_p6 = por %p3646_p3, %p116_p2  ;;  %s2985_s11 = smov [#allocation8]  }
  0x10   : > { %p3085_p8 = pnand %p2057_p5, %p226_p7  ;;  %s247_s12 = sshll.u32 %s2985_s11, 4  ;;  %s248_s12 = int_to_ptr.vmem [resolvable:$true] %s247_s12 }
  0x11   : > { %p2638_p10 = scmp.lt.s32.totalorder %s2983_s29, 3  ;;  %s33_s15 = sadd.s32 1, %s2979_s28 }
  0x12   : > { %p2618_p9 = pneg %p3085_p8  ;;  %s2783_s16 = scalar_lea.vmem %s248_s12, 3200 }
  0x13   : > { %p3098_p12 = pnand %p2638_p10, %p112_p4  ;;  %p2784_p0 = scmp.ne.s32.totalorder %s248_s12, %s2783_s16 }
  0x14   : > { %p3094_p11 = pnand %p2618_p9, %p3646_p3  ;;  %p2791_p5 = scmp.lt.s32.totalorder %s248_s12, %s248_s12 }
  0x15   : > { %p2792_p7 = scmp.lt.s32.totalorder %s2783_s16, %s2783_s16 }
  0x16   : > { %p2774_p13 = pneg %p3094_p11 }
  0x17   : > { %p2793_p9 = por %p2792_p7, %p2791_p5 }
  0x18   : > { %p2786_p1 = pnand %p2784_p0, %p2774_p13 }
  0x1a   : > { %p2787_p2 = pneg %p2786_p1 }
  0x1c   : > { %p2794_p3 = pnand %p2793_p9, %p2787_p2 }
  0x1e   : > { %2797 = shalt.err (!%p2794_p3)
}
  0x1f   : > { %s3647_s17 = smov 128   ;;  %s3648_s18 = smov 8  }
  0x20   : > { %s3661_s1 = sld [smem:[#allocation26_spill]]  ;;  %p35_p4 = scmp.ge.s32.totalorder %s33_s15, 3 }
  0x21   : > { %s274_s21 = sand.u32 1, %s2983_s29   ;;  %s276_s22 = sand.u32 1, %s2971_s26  }
  0x22   : > { %s3682_s15 = smov (%p35_p4, %s33_s15), 0  ;;  %s3120_s23 = sshll.u32 %s276_s22, 6 }
  0x23   : > { %3662 = sst [smem:[#allocation24_spill]] %s3682_s15  ;;  %s100_s24 = ssub.s32 %s2979_s28, %s3682_s15 }
  0x24   : > { %p101_p3 = scmp.eq.s32.totalorder %s100_s24, 0  ;;  %s2209_s11 = sshll.u32 %s2979_s28, 10 }
  0x25   : > { %s3663_s3 = sld [smem:[#allocation27_spill]]  ;;  %s278_s19 = scalar_lea.vmem [#allocation11], %s3120_s23 }
  0x26   : > { %2624 = dma.hbm_to_vmem [thread:$0]  (!%p3094_p11), %s3661_s1, 3200, %s248_s12, [#allocation5], %s3647_s17, %s3647_s17, %s3648_s18  }
  0x27   : > { %s285_s20 = sshll.u32 %s278_s19, 4  ;;  %s3664_s12 = sadd.s32 1, %s2971_s26  ;;  %s286_s20 = int_to_ptr.vmem [resolvable:$true] %s285_s20 }
  0x28   : > { %s3132_s17 = scalar_select %p101_p3, %s2971_s26, %s3664_s12  }
  0x29   : > { %s3134_s18 = scalar_lea.sflag [#allocation5], %s274_s21  ;;  %p2800_p10 = pneg %p3098_p12 }
  0x2a   : > { %3665 = sst [smem:[#allocation25_spill]] %s3132_s17  ;;  %s2811_s22 = scalar_lea.vmem %s286_s20, 1024 }
  0x2b   : > { %s284_s7 = scalar_lea.hbm %s3663_s3, %s2209_s11  ;;  %p2812_p0 = scmp.ne.s32.totalorder %s286_s20, %s2811_s22 }
  0x2c   : > { %s2988_s24 = smov [#allocation11]  }
  0x2d   : > { %p2814_p1 = pnand %p2812_p0, %p2800_p10  ;;  %s2816_s1 = sshll.u32 %s2988_s24, 4  ;;  %s2817_s1 = int_to_ptr.vmem [resolvable:$false] %s2816_s1 }
  0x2e   : > { %s2818_s8 = scalar_lea.vmem %s2817_s1, 2048  ;;  %p2819_p5 = scmp.lt.s32.totalorder %s286_s20, %s2817_s1 }
  0x2f   : > { %p2815_p2 = pneg %p2814_p1  ;;  %p2820_p7 = scmp.lt.s32.totalorder %s2818_s8, %s2811_s22 }
  0x31   : > { %p2821_p9 = por %p2820_p7, %p2819_p5 }
  0x33   : > { %p2822_p4 = pnand %p2821_p9, %p2815_p2 }
  0x35   : > { %2825 = shalt.err (!%p2822_p4)
}
  0x36   : > { %s2989_s16 = smov 64   ;;  %s2990_s21 = smov 4  }
  0x37   : > { %2631 = dma.hbm_to_vmem [thread:$0]  (!%p3098_p12), %s284_s7, 1024, %s286_s20, %s3134_s18, %s2989_s16, %s2989_s16, %s2990_s21  }
  0x38   : > { %s2991_s19 = smov [#allocation4]   ;;  %s2992_s22 = smov [#allocation9]  }
  0x39   : > { %2621 = dma.hbm_to_smem (!%p3094_p11), %s3638_s0, 16, %s2991_s19, [#allocation7]  }
  0x3a   : > { %s260_s24 = sshll.u32 %s2992_s22, 4  ;;  %s3155_s15 = scalar_lea.hbm %s3643_s5, %s2209_s11  ;;  %s261_s24 = int_to_ptr.vmem [resolvable:$true] %s260_s24 }
  0x3b   : > { %s305_s28 = scalar_lea.vmem [#allocation12], %s3120_s23  ;;  %s2848_s26 = scalar_lea.vmem %s261_s24, 3200 }
  0x3c   : > { %s312_s17 = sshll.u32 %s305_s28, 4  ;;  %p2849_p3 = scmp.ne.s32.totalorder %s261_s24, %s2848_s26  ;;  %s313_s17 = int_to_ptr.vmem [resolvable:$true] %s312_s17 }
  0x3d   : > { %p2856_p2 = scmp.lt.s32.totalorder %s261_s24, %s261_s24  ;;  %p2857_p5 = scmp.lt.s32.totalorder %s2848_s26, %s2848_s26 }
  0x3e   : > { %p2851_p0 = pnand %p2849_p3, %p2774_p13 }
  0x3f   : > { %p2858_p7 = por %p2857_p5, %p2856_p2 }
  0x40   : > { %p2852_p1 = pneg %p2851_p0 }
  0x42   : > { %p2859_p9 = pnand %p2858_p7, %p2852_p1 }
  0x44   : > { %2862 = shalt.err (!%p2859_p9)
}
  0x45   : > { %s3666_s7 = smov 8   ;;  %s3667_s3 = smov 128  }
  0x46   : > { %2627 = dma.hbm_to_vmem [thread:$0]  (!%p3094_p11), %s3640_s2, 3200, %s261_s24, [#allocation10], %s3667_s3, %s3667_s3, %s3666_s7  }
  0x47   : > { %s2876_s28 = scalar_lea.vmem %s313_s17, 1024  ;;  %s2993_s26 = smov [#allocation12]  }
  0x48   : > { %p2877_p4 = scmp.ne.s32.totalorder %s313_s17, %s2876_s28  ;;  %s2881_s23 = sshll.u32 %s2993_s26, 4  ;;  %s2882_s23 = int_to_ptr.vmem [resolvable:$false] %s2881_s23 }
  0x49   : > { %s2883_s19 = scalar_lea.vmem %s2882_s23, 2048  ;;  %p2884_p0 = scmp.lt.s32.totalorder %s313_s17, %s2882_s23 }
  0x4a   : > { %p2879_p13 = pnand %p2877_p4, %p2800_p10  ;;  %p2885_p1 = scmp.lt.s32.totalorder %s2883_s19, %s2876_s28 }
  0x4c   : > { %p2880_p3 = pneg %p2879_p13  ;;  %p2886_p2 = por %p2885_p1, %p2884_p0 }
  0x4e   : > { %p2887_p5 = pnand %p2886_p2, %p2880_p3 }
  0x50   : > { %2890 = shalt.err (!%p2887_p5)
}
  0x51   : > { %2634 = dma.hbm_to_vmem [thread:$0]  (!%p3098_p12), %s3155_s15, 1024, %s313_s17, %s3134_s18, %s2989_s16, %s2989_s16, %s2990_s21  }
  0x52   : > { %330 = sbr.rel (%p3085_p8) target bundleno = 969 (0x3c9), region = 48  ;;  %p3668_p11 = scmp.eq.s32.totalorder (!%p3085_p8), %s3069_s30, 0 }
  0x57   : > { %2940 = dma.done.wait (%p3668_p11), [#allocation7], 16   ;;  %p3669_p10 = pmov %p3668_p11 }
  0x59   : > { %2942 = vsyncadd (%p3669_p10), [#allocation7], 4294967280  ;;  %p3670_p7 = pmov %p3669_p10 }
  0x5b   : > { %2944 = dma.done.wait (%p3670_p7), [#allocation5], 3200   ;;  %p3671_p9 = pmov %p3670_p7 }
  0x5c   : > { %p3672_p4 = pmov %p3670_p7 }
  0x5d   : > { %2946 = vsyncadd (%p3671_p9), [#allocation5], 4294964096 }
  0x5e   : > { %2948 = dma.done.wait (%p3672_p4), [#allocation10], 3200   ;;  %p3673_p12 = pmov %p3672_p4 }
  0x5f   : > { %s344_s10 = sand.u32 1, %s3069_s30   ;;  %s346_s13 = sand.u32 1, %s2967_s25  }
  0x60   : > { %2950 = vsyncadd (%p3673_p12), [#allocation10], 4294964096  ;;  %s2072_s14 = sshll.u32 %s346_s13, 6  ;;  %s345_s15 = scalar_lea.sflag [#allocation5], %s344_s10 }
  0x61   : > { %s3195_s17 = scalar_lea.vmem [#allocation11], %s2072_s14 }
  0x62   : > { %2952 = dma.done.wait (%p3080_p6), %s345_s15, 2048  }
  0x63   : > { %2954 = vsyncadd (%p3080_p6), %s345_s15, 4294965248  ;;  %s3201_s18 = scalar_lea.vmem [#allocation12], %s2072_s14 }
  0x64   : > { %362 = sfence }
  0x65   : > { %p395_p8 = scmp.lt.s32.totalorder %s2975_s27, 2  ;;  %p403_p13 = scmp.lt.s32.totalorder %s2975_s27, 0 }
  0x66   : > { %s404_s16 = ssub.s32 0, %s2975_s27  ;;  %s416_s21 = sadd.s32 1, %s2975_s27 }
  0x67   : > { %s3208_s12 = scalar_select %p395_p8, %s2975_s27, 2 }
  0x68   : > { %s2074_s9 = smin.u32 %s2975_s27, %s404_s16  ;;  %p417_p6 = scmp.lt.s32.totalorder %s416_s21, 0 }
  0x69   : > { %s397_s24 = scalar_lea.vmem %s3642_s4, %s3208_s12  ;;  %s400_s3 = scalar_lea.vmem %s3644_s6, %s3208_s12 }
  0x6a   : > { %s406_s11 = sand.u32 1, %s2074_s9   ;;  %s418_s20 = ssub.s32 0, %s416_s21 }
  0x6b   : > { %s407_s28 = ssub.s32 0, %s406_s11  ;;  %s2077_s26 = smin.u32 %s418_s20, %s416_s21 }
  0x6c   : > { %s3684_s28 = smov (!%p403_p13, %s407_s28), %s406_s11  ;;  %s420_s23 = sand.u32 1, %s2077_s26  }
  0x6d   : > { %p430_p3 = scmp.eq.s32.totalorder %s2975_s27, 0  ;;  %p2076_p0 = scmp.lt.s32.totalorder %s3684_s28, 0 }
  0x6e   : > { %s413_s19 = sadd.s32 2, %s3684_s28  ;;  %s421_s10 = ssub.s32 0, %s420_s23 }
  0x6f   : > { %s3686_s19 = smov (!%p2076_p0, %s413_s19), %s3684_s28  ;;  %s3688_s10 = smov (!%p417_p6, %s421_s10), %s420_s23 }
  0x70   : > { %s415_s13 = smul.u32 200, %s3686_s19  ;;  %p2079_p1 = scmp.lt.s32.totalorder %s3688_s10, 0 }
  0x71   : > { %s427_s14 = sadd.s32 2, %s3688_s10  ;;  %435 = sbr.rel (!%p430_p3) target bundleno = 149 (0x95), region = 72 }
  0x72   : > { %s3690_s14 = smov (!%p2079_p1, %s427_s14), %s3688_s10 }
  0x73   : > { %s429_s15 = smul.u32 200, %s3690_s14 }
  0x76   : > { %v469_v0 = vld [vmem:[#allocation8] sm:$0xff]  ;;  %v471_v1 = vld [vmem:[#allocation8 + $0x8] sm:$0xff]  ;;  %v473_v2 = vld [vmem:[#allocation8 + $0x10] sm:$0xff] }
  0x77   : > { %470 = vst [vmem:[#allocation2] sm:$0xff] %v469_v0  ;;  %472 = vst [vmem:[#allocation2 + $0x8] sm:$0xff] %v471_v1  ;;  %v475_v3 = vld [vmem:[#allocation8 + $0x18] sm:$0xff]  ;;  %v477_v4 = vld [vmem:[#allocation8 + $0x20] sm:$0xff] }
  0x78   : > { %474 = vst [vmem:[#allocation2 + $0x10] sm:$0xff] %v473_v2  ;;  %v479_v5 = vld [vmem:[#allocation8 + $0x28] sm:$0xff]  ;;  %476 = vst [vmem:[#allocation2 + $0x18] sm:$0xff] %v475_v3  ;;  %v481_v6 = vld [vmem:[#allocation8 + $0x30] sm:$0xff] }
  0x79   : > { %478 = vst [vmem:[#allocation2 + $0x20] sm:$0xff] %v477_v4  ;;  %480 = vst [vmem:[#allocation2 + $0x28] sm:$0xff] %v479_v5  ;;  %v483_v7 = vld [vmem:[#allocation8 + $0x38] sm:$0xff]  ;;  %v485_v8 = vld [vmem:[#allocation8 + $0x40] sm:$0xff] }
  0x7a   : > { %482 = vst [vmem:[#allocation2 + $0x30] sm:$0xff] %v481_v6  ;;  %484 = vst [vmem:[#allocation2 + $0x38] sm:$0xff] %v483_v7  ;;  %v487_v9 = vld [vmem:[#allocation8 + $0x48] sm:$0xff]  ;;  %v489_v10 = vld [vmem:[#allocation8 + $0x50] sm:$0xff] }
  0x7b   : > { %486 = vst [vmem:[#allocation2 + $0x40] sm:$0xff] %v485_v8  ;;  %v491_v11 = vld [vmem:[#allocation8 + $0x58] sm:$0xff]  ;;  %488 = vst [vmem:[#allocation2 + $0x48] sm:$0xff] %v487_v9  ;;  %v493_v12 = vld [vmem:[#allocation8 + $0x60] sm:$0xff] }
  0x7c   : > { %490 = vst [vmem:[#allocation2 + $0x50] sm:$0xff] %v489_v10  ;;  %492 = vst [vmem:[#allocation2 + $0x58] sm:$0xff] %v491_v11  ;;  %v495_v13 = vld [vmem:[#allocation8 + $0x68] sm:$0xff]  ;;  %v497_v14 = vld [vmem:[#allocation8 + $0x70] sm:$0xff] }
  0x7d   : > { %494 = vst [vmem:[#allocation2 + $0x60] sm:$0xff] %v493_v12  ;;  %496 = vst [vmem:[#allocation2 + $0x68] sm:$0xff] %v495_v13  ;;  %v499_v15 = vld [vmem:[#allocation8 + $0x78] sm:$0xff]  ;;  %v501_v16 = vld [vmem:[#allocation8 + $0x80] sm:$0xff] }
  0x7e   : > { %498 = vst [vmem:[#allocation2 + $0x70] sm:$0xff] %v497_v14  ;;  %v503_v17 = vld [vmem:[#allocation8 + $0x88] sm:$0xff]  ;;  %500 = vst [vmem:[#allocation2 + $0x78] sm:$0xff] %v499_v15  ;;  %v505_v18 = vld [vmem:[#allocation8 + $0x90] sm:$0xff] }
  0x7f   : > { %502 = vst [vmem:[#allocation2 + $0x80] sm:$0xff] %v501_v16  ;;  %504 = vst [vmem:[#allocation2 + $0x88] sm:$0xff] %v503_v17  ;;  %v507_v19 = vld [vmem:[#allocation8 + $0x98] sm:$0xff]  ;;  %v509_v20 = vld [vmem:[#allocation8 + $0xa0] sm:$0xff] }
  0x80   : > { %506 = vst [vmem:[#allocation2 + $0x90] sm:$0xff] %v505_v18  ;;  %508 = vst [vmem:[#allocation2 + $0x98] sm:$0xff] %v507_v19  ;;  %v511_v21 = vld [vmem:[#allocation8 + $0xa8] sm:$0xff]  ;;  %v513_v22 = vld [vmem:[#allocation8 + $0xb0] sm:$0xff] }
  0x81   : > { %510 = vst [vmem:[#allocation2 + $0xa0] sm:$0xff] %v509_v20  ;;  %v515_v23 = vld [vmem:[#allocation8 + $0xb8] sm:$0xff]  ;;  %512 = vst [vmem:[#allocation2 + $0xa8] sm:$0xff] %v511_v21  ;;  %v517_v24 = vld [vmem:[#allocation8 + $0xc0] sm:$0xff] }
  0x82   : > { %514 = vst [vmem:[#allocation2 + $0xb0] sm:$0xff] %v513_v22  ;;  %516 = vst [vmem:[#allocation2 + $0xb8] sm:$0xff] %v515_v23 }
  0x83   : > { %518 = vst [vmem:[#allocation2 + $0xc0] sm:$0xff] %v517_v24 }
  0x84   : > { %526 = vsyncadd [#allocation14], 3200 }
  0x85   : > { %2955 = dma.done.wait [#allocation14], 3200 }
  0x86   : > { %2956 = vsyncadd [#allocation14], 4294964096  ;;  %v530_v25 = vld [vmem:[#allocation8] sm:$0xff]  ;;  %v531_v26 = vld [vmem:[#allocation8 + $0x8] sm:$0xff] }
  0x87   : > { %v532_v27 = vld [vmem:[#allocation8 + $0x10] sm:$0xff]  ;;  %v555_v28 = vmax.f32 %v530_v25, 0.0  ;;  %v556_v29 = vmax.f32 %v531_v26, 0.0  ;;  %v533_v30 = vld [vmem:[#allocation8 + $0x18] sm:$0xff]  ;;  %v534_v32 = vld [vmem:[#allocation8 + $0x20] sm:$0xff] }
  0x88   : > { %v557_v31 = vmax.f32 %v532_v27, 0.0  ;;  %v535_v33 = vld [vmem:[#allocation8 + $0x28] sm:$0xff]  ;;  %v558_v34 = vmax.f32 %v533_v30, 0.0  ;;  %v559_v35 = vmax.f32 %v534_v32, 0.0  ;;  %v536_v37 = vld [vmem:[#allocation8 + $0x30] sm:$0xff]  ;;  %v537_v38 = vld [vmem:[#allocation8 + $0x38] sm:$0xff] }
  0x89   : > { %v560_v36 = vmax.f32 %v535_v33, 0.0  ;;  %v538_v39 = vld [vmem:[#allocation8 + $0x40] sm:$0xff]  ;;  %v2265_v40 = vpack.c.bf16 %v556_v29, %v555_v28  ;;  %v561_v41 = vmax.f32 %v536_v37, 0.0  ;;  %v562_v42 = vmax.f32 %v537_v38, 0.0  ;;  %v539_v43 = vld [vmem:[#allocation8 + $0x48] sm:$0xff]  ;;  %v540_v45 = vld [vmem:[#allocation8 + $0x50] sm:$0xff] }
  0x8a   : > { %v563_v44 = vmax.f32 %v538_v39, 0.0  ;;  %v541_v46 = vld [vmem:[#allocation8 + $0x58] sm:$0xff]  ;;  %v2270_v47 = vpack.c.bf16 %v558_v34, %v557_v31  ;;  %v564_v49 = vmax.f32 %v539_v43, 0.0  ;;  %v565_v50 = vmax.f32 %v540_v45, 0.0  ;;  %v542_v51 = vld [vmem:[#allocation8 + $0x60] sm:$0xff]  ;;  %v543_v52 = vld [vmem:[#allocation8 + $0x68] sm:$0xff] }
  0x8b   : > { %v2275_v48 = vpack.c.bf16 %v560_v36, %v559_v35  ;;  %v544_v53 = vld [vmem:[#allocation8 + $0x70] sm:$0xff]  ;;  %2266 = vst [vmem:[#allocation3] sm:$0xff] %v2265_v40   ;;  %v2280_v54 = vpack.c.bf16 %v562_v42, %v561_v41  ;;  %v566_v55 = vmax.f32 %v541_v46, 0.0  ;;  %v567_v56 = vmax.f32 %v542_v51, 0.0  ;;  %v545_v58 = vld [vmem:[#allocation8 + $0x78] sm:$0xff]  ;;  %v546_v59 = vld [vmem:[#allocation8 + $0x80] sm:$0xff] }
  0x8c   : > { %v568_v57 = vmax.f32 %v543_v52, 0.0  ;;  %v547_v60 = vld [vmem:[#allocation8 + $0x88] sm:$0xff]  ;;  %2382 = vst [vmem:[#allocation3 + $0x8] sm:$0xff] %v2270_v47   ;;  %v2285_v61 = vpack.c.bf16 %v564_v49, %v563_v44  ;;  %v569_v62 = vmax.f32 %v544_v53, 0.0  ;;  %v570_v63 = vmax.f32 %v545_v58, 0.0  ;;  %v548_v1 = vld [vmem:[#allocation8 + $0x90] sm:$0xff] }
  0x8d   : > { %2383 = vst [vmem:[#allocation3 + $0x10] sm:$0xff] %v2275_v48   ;;  %v571_v0 = vmax.f32 %v546_v59, 0.0  ;;  %v549_v2 = vld [vmem:[#allocation8 + $0x98] sm:$0xff]  ;;  %v550_v3 = vld [vmem:[#allocation8 + $0xa0] sm:$0xff]  ;;  %2384 = vst [vmem:[#allocation3 + $0x18] sm:$0xff] %v2280_v54   ;;  %v2290_v4 = vpack.c.bf16 %v566_v55, %v565_v50  ;;  %v572_v6 = vmax.f32 %v547_v60, 0.0 }
  0x8e   : > { %v2295_v5 = vpack.c.bf16 %v568_v57, %v567_v56  ;;  %v573_v7 = vmax.f32 %v548_v1, 0.0  ;;  %v551_v8 = vld [vmem:[#allocation8 + $0xa8] sm:$0xff]  ;;  %v552_v9 = vld [vmem:[#allocation8 + $0xb0] sm:$0xff]  ;;  %v553_v10 = vld [vmem:[#allocation8 + $0xb8] sm:$0xff]  ;;  %2385 = vst [vmem:[#allocation3 + $0x20] sm:$0xff] %v2285_v61   ;;  %v2300_v11 = vpack.c.bf16 %v570_v63, %v569_v62  ;;  %v574_v12 = vmax.f32 %v549_v2, 0.0 }
  0x8f   : > { %v575_v13 = vmax.f32 %v550_v3, 0.0  ;;  %v576_v14 = vmax.f32 %v551_v8, 0.0  ;;  %v554_v15 = vld [vmem:[#allocation8 + $0xc0] sm:$0xff]  ;;  %2386 = vst [vmem:[#allocation3 + $0x28] sm:$0xff] %v2290_v4   ;;  %v2305_v16 = vpack.c.bf16 %v572_v6, %v571_v0  ;;  %v577_v17 = vmax.f32 %v552_v9, 0.0 }
  0x90   : > { %2387 = vst [vmem:[#allocation3 + $0x30] sm:$0xff] %v2295_v5   ;;  %v578_v18 = vmax.f32 %v553_v10, 0.0  ;;  %v579_v19 = vmax.f32 %v554_v15, 0.0  ;;  %2388 = vst [vmem:[#allocation3 + $0x38] sm:$0xff] %v2300_v11   ;;  %v2310_v20 = vpack.c.bf16 %v574_v12, %v573_v7 }
  0x91   : > { %v2315_v21 = vpack.c.bf16 %v576_v14, %v575_v13  ;;  %2389 = vst [vmem:[#allocation3 + $0x40] sm:$0xff] %v2305_v16  }
  0x92   : > { %v2320_v22 = vpack.c.bf16 %v578_v18, %v577_v17  ;;  %v2236_v23 = vpack.c.bf16 %v579_v19, %v579_v19  ;;  %2390 = vst [vmem:[#allocation3 + $0x48] sm:$0xff] %v2310_v20  }
  0x93   : > { %2391 = vst [vmem:[#allocation3 + $0x50] sm:$0xff] %v2315_v21  }
  0x94   : > { %2392 = vst [vmem:[#allocation3 + $0x58] sm:$0xff] %v2320_v22   ;;  %705 = vst [vmem:[#allocation3 + $0x60] sm:$0xf] %v2236_v23 }
  0x95 PF: > { %s736_s16 = sshra.s32 %s415_s13, 3  ;;  %vm954_vm0 = vcmask 588800   ;;  %v2994_v24 = vmov 0   ;;  %v2720_v25 = vld [vmem:[#allocation9 + $0x4] ss:$8 sps:$4 sm:$0xff]   ;;  %v2995_v31 = vmov 0.0  }
  0x96   : > { %998 = vmatprep.subr.bf16.mxu0 %v2994_v24  ;;  %s2106_s21 = sshll.u32 %s736_s16, 2  ;;  %2146 = vmatprep.mubr.msk.bf16.mxu0 %vm954_vm0, %v2720_v25  ;;  %v2755_v36 = vld [vmem:[%s3195_s17 + $0x38] sm:$0xff]   ;;  %vm994_vm1 = vcmask 1043456   ;;  %v2757_v38 = vld [vmem:[%s3195_s17 + $0x30] sm:$0xff]   ;;  %v2758_v40 = vld [vmem:[%s3195_s17 + $0x28] sm:$0xff]   ;;  %vm2996_vm2 = vmmov 0  }
  0x97   : > { %s3229_s9 = scalar_lea.vmem [#allocation3], %s2106_s21  ;;  %2582 = vmatprep.subr.bf16.mxu1 %v2995_v31  ;;  %v2759_v42 = vld [vmem:[%s3195_s17 + $0x20] sm:$0xff]   ;;  %v2760_v44 = vld [vmem:[%s3195_s17 + $0x18] sm:$0xff]   ;;  %v2761_v46 = vld [vmem:[%s3195_s17 + $0x10] sm:$0xff]   ;;  %2482 = vmatprep.mubr.msk.bf16.mxu1 %vm2996_vm2, %v2995_v31  ;;  %s3289_s22 = scalar_lea.vmem [#allocation2], %s415_s13 }
  0x98   : > { %2590 = vmatpush3.bf16.msra.mxu1 %v2755_v36  ;;  %v2718_v47 = vld [vmem:[#allocation9] ss:$8 sps:$4 sm:$0xff]   ;;  %v2721_v48 = vld [vmem:[#allocation9 + $0x14] ss:$8 sps:$4 sm:$0xff]   ;;  %v2723_v51 = vld [vmem:[#allocation9 + $0x10] ss:$8 sps:$4 sm:$0xff]  }
  0x99   : > { %2583 = vmatprep.subr.bf16.mxu1 %v2995_v31  ;;  %v2762_v49 = vld [vmem:[%s3195_s17 + $0x8] sm:$0xff]   ;;  %v2763_v50 = vld [vmem:[%s3195_s17] sm:$0xff]   ;;  %v735_v7 = vld [vmem:[#allocation9 + $0xc0] sm:$0xff]  ;;  %s1161_s17 = sld [smem:[#allocation4 + %s2975_s27]]  ;;  %p2177_p2 = scmp.ge.s32.totalorder %s2975_s27, 2 }
  0x9a   : > { %v2724_v52 = vld [vmem:[#allocation9 + $0x24] ss:$8 sps:$4 sm:$0xff]   ;;  %v2726_v53 = vld [vmem:[#allocation9 + $0x20] ss:$8 sps:$4 sm:$0xff]   ;;  %v2727_v54 = vld [vmem:[#allocation9 + $0x34] ss:$8 sps:$4 sm:$0xff]   ;;  %v2132_v9 = vcombine.high %v735_v7, %v735_v7  ;;  %v2131_v10 = vcombine.low %v735_v7, %v735_v7 }
  0x9b   : > { %v2705_v26 = vld [vmem:[%s3229_s9 + $0x38] sm:$0xff]   ;;  %v2706_v27 = vld [vmem:[%s3229_s9 + $0x30] sm:$0xff]   ;;  %v2707_v28 = vld [vmem:[%s3229_s9 + $0x28] sm:$0xff]   ;;  %s3527_s12 = sshra.s32 (!%p2177_p2), %s429_s15, 3 }
  0x9c   : > { %999 = vmatpush1.bf16.msra.mxu0 %v2705_v26  ;;  %v2708_v29 = vld [vmem:[%s3229_s9 + $0x20] sm:$0xff]   ;;  %v2709_v30 = vld [vmem:[%s3229_s9 + $0x18] sm:$0xff]   ;;  %v2710_v32 = vld [vmem:[%s3229_s9 + $0x10] sm:$0xff]   ;;  %2591 = vmatpush3.bf16.msra.mxu1 %v2757_v38  ;;  %s2203_s11 = sshll.u32 (!%p2177_p2), %s3527_s12, 2 }
  0x9d   : > { %1000 = vmatprep.subr.bf16.mxu0 %v2994_v24  ;;  %v2711_v33 = vld [vmem:[%s3229_s9 + $0x8] sm:$0xff]   ;;  %v2712_v34 = vld [vmem:[%s3229_s9] sm:$0xff]   ;;  %v2714_v39 = vld [vmem:[%s3229_s9 + $0x58] sm:$0xff]   ;;  %2584 = vmatprep.subr.bf16.mxu1 %v2995_v31  ;;  %s1839_s20 = scalar_lea.vmem (!%p2177_p2), [#allocation3], %s2203_s11 }
  0x9e   : > { %v2713_v35 = vld [vmem:[%s3229_s9 + $0x60] ss:$0 sps:$4 sm:$0xff]   ;;  %v2715_v41 = vld [vmem:[%s3229_s9 + $0x50] sm:$0xff]   ;;  %v2716_v43 = vld [vmem:[%s3229_s9 + $0x48] sm:$0xff]  }
  0x9f   : > { %v996_v37 = vsel %vm994_vm1, %v2713_v35, 0  ;;  %v2717_v45 = vld [vmem:[%s3229_s9 + $0x40] sm:$0xff]   ;;  %v2730_v56 = vld [vmem:[#allocation9 + $0x44] ss:$8 sps:$4 sm:$0xff]   ;;  %v2732_v57 = vld [vmem:[#allocation9 + $0x40] ss:$8 sps:$4 sm:$0xff]  }
  0xa0   : > { %1001 = vmatpush1.bf16.msra.mxu0 %v2706_v27  ;;  %2592 = vmatpush3.bf16.msra.mxu1 %v2758_v40  ;;  %v2729_v55 = vld [vmem:[#allocation9 + $0x30] ss:$8 sps:$4 sm:$0xff]   ;;  %v2733_v58 = vld [vmem:[#allocation9 + $0x54] ss:$8 sps:$4 sm:$0xff]   ;;  %v2736_v60 = vld [vmem:[#allocation9 + $0x64] ss:$8 sps:$4 sm:$0xff]  }
  0xa1   : > { %1002 = vmatprep.subr.bf16.mxu0 %v2994_v24  ;;  %2585 = vmatprep.subr.bf16.mxu1 %v2995_v31  ;;  %v2735_v59 = vld [vmem:[#allocation9 + $0x50] ss:$8 sps:$4 sm:$0xff]   ;;  %v2738_v61 = vld [vmem:[#allocation9 + $0x60] ss:$8 sps:$4 sm:$0xff]   ;;  %v2739_v62 = vld [vmem:[#allocation9 + $0x74] ss:$8 sps:$4 sm:$0xff]  }
  0xa2   : > { %v2741_v63 = vld [vmem:[#allocation9 + $0x70] ss:$8 sps:$4 sm:$0xff]   ;;  %v2742_v0 = vld [vmem:[#allocation9 + $0x84] ss:$8 sps:$4 sm:$0xff]   ;;  %v2744_v1 = vld [vmem:[#allocation9 + $0x80] ss:$8 sps:$4 sm:$0xff]  }
  0xa3   : > { %v2745_v2 = vld [vmem:[#allocation9 + $0x94] ss:$8 sps:$4 sm:$0xff]   ;;  %v2747_v3 = vld [vmem:[#allocation9 + $0x90] ss:$8 sps:$4 sm:$0xff]   ;;  %v2748_v4 = vld [vmem:[#allocation9 + $0xa4] ss:$8 sps:$4 sm:$0xff]  }
  0xa4   : > { %1003 = vmatpush1.bf16.msra.mxu0 %v2707_v28  ;;  %2593 = vmatpush3.bf16.msra.mxu1 %v2759_v42  ;;  %v2750_v5 = vld [vmem:[#allocation9 + $0xa0] ss:$8 sps:$4 sm:$0xff]   ;;  %v2751_v6 = vld [vmem:[#allocation9 + $0xb4] ss:$8 sps:$4 sm:$0xff]   ;;  %v2753_v8 = vld [vmem:[#allocation9 + $0xb0] ss:$8 sps:$4 sm:$0xff]  }
  0xa5   : > { %1004 = vmatprep.subr.bf16.mxu0 %v2994_v24  ;;  %2586 = vmatprep.subr.bf16.mxu1 %v2995_v31  ;;  %s1162_s1 = sadd.f32 1.0, %s1161_s17  ;;  %v1136_v11 = vld [vmem:[%s3289_s22] sm:$0xff]  ;;  %v1137_v13 = vld [vmem:[%s3289_s22 + $0x8] sm:$0xff]  ;;  %v1138_v22 = vld [vmem:[%s3289_s22 + $0x10] sm:$0xff] }
  0xa6   : > { %v1139_v23 = vld [vmem:[%s3289_s22 + $0x18] sm:$0xff]  ;;  %v1141_v35 = vld [vmem:[%s3289_s22 + $0x28] sm:$0xff] }
  0xa7   : > { %v3292_v12 = vstv %s1162_s1 }
  0xa8   : > { %1005 = vmatpush1.bf16.msra.mxu0 %v2708_v29  ;;  %2594 = vmatpush3.bf16.msra.mxu1 %v2760_v44  ;;  %v1164_v15 = vmul.f32 %v3292_v12, %v1136_v11  ;;  %v1165_v16 = vmul.f32 %v3292_v12, %v1137_v13  ;;  %v1166_v26 = vmul.f32 %v3292_v12, %v1138_v22 }
  0xa9   : > { %1006 = vmatprep.subr.bf16.mxu0 %v2994_v24  ;;  %2587 = vmatprep.subr.bf16.mxu1 %v2995_v31  ;;  %v1167_v27 = vmul.f32 %v3292_v12, %v1139_v23  ;;  %v2765_v23 = vld [vmem:[%s3201_s18 + $0x30] sm:$0xff]  }
  0xac   : > { %1007 = vmatpush1.bf16.msra.mxu0 %v2709_v30  ;;  %2595 = vmatpush3.bf16.msra.mxu1 %v2761_v46 }
  0xad   : > { %1008 = vmatprep.subr.bf16.mxu0 %v2994_v24  ;;  %2588 = vmatprep.subr.bf16.mxu1 %v2995_v31 }
  0xb0   : > { %1009 = vmatpush1.bf16.msra.mxu0 %v2710_v32  ;;  %2596 = vmatpush3.bf16.msra.mxu1 %v2762_v49 }
  0xb1   : > { %1010 = vmatprep.subr.bf16.mxu0 %v2994_v24  ;;  %2589 = vmatprep.subr.bf16.mxu1 %v2995_v31 }
  0xb4   : > { %1011 = vmatpush1.bf16.msra.mxu0 %v2711_v33  ;;  %2597 = vmatpush3.bf16.msra.mxu1 %v2763_v50 }
  0xb5   : > { %1012 = vmatprep.subr.bf16.mxu0 %v2994_v24  ;;  %2514 = vmatprep.subr.bf16.mxu1 %v2995_v31 }
  0xb8   : > { %1013 = vmatpush1.bf16.msra.mxu0 %v2712_v34  ;;  %v1140_v34 = vld [vmem:[%s3289_s22 + $0x20] sm:$0xff] }
  0xb9   : > { %1020 = vmatprep.subr.bf16.mxu0 %v2994_v24 }
  0xbc   : > { %1021 = vmatpush2.bf16.msra.mxu0 %v996_v37 }
  0xbd   : > { %1022 = vmatprep.subr.bf16.mxu0 %v2994_v24 }
  0xc0   : > { %1023 = vmatpush2.bf16.msra.mxu0 %v2714_v39  ;;  %v1169_v39 = vmul.f32 %v3292_v12, %v1141_v35 }
  0xc1   : > { %1024 = vmatprep.subr.bf16.mxu0 %v2994_v24 }
  0xc4   : > { %1025 = vmatpush2.bf16.msra.mxu0 %v2715_v41 }
  0xc5   : > { %1026 = vmatprep.subr.bf16.mxu0 %v2994_v24 }
  0xc8   : > { %1027 = vmatpush2.bf16.msra.mxu0 %v2716_v43 }
  0xc9   : > { %1028 = vmatprep.subr.bf16.mxu0 %v2994_v24 }
  0xcc   : > { %1029 = vmatpush2.bf16.msra.mxu0 %v2717_v45  ;;  %v1142_v45 = vld [vmem:[%s3289_s22 + $0x30] sm:$0xff] }
  0xcd   : > { %2446 = vmatprep.subr.bf16.mxu0 %v2995_v31 }
  0xcf   : > { %1031 = vmatmul.mubr.bf16.vlgmr.msra.gmra.mxu0 %v2718_v47 }
  0xd0   : > { %2147 = vmatprep.mubr.msk.bf16.mxu0 %vm954_vm0, %v2721_v48  ;;  %2447 = vmatpush3.bf16.msra.mxu0 %v2755_v36 }
  0xd1   : > { %2448 = vmatprep.subr.bf16.mxu0 %v2995_v31 }
  0xd4   : > { %2449 = vmatpush3.bf16.msra.mxu0 %v2757_v38  ;;  %v1168_v38 = vmul.f32 %v3292_v12, %v1140_v34 }
  0xd5   : > { %2450 = vmatprep.subr.bf16.mxu0 %v2995_v31 }
  0xd7   : > { %1039 = vmatmul.mubr.bf16.gmra.mxu0 %v2723_v51 }
  0xd8   : > { %2148 = vmatprep.mubr.msk.bf16.mxu0 %vm954_vm0, %v2724_v52  ;;  %2451 = vmatpush3.bf16.msra.mxu0 %v2758_v40 }
  0xd9   : > { %2452 = vmatprep.subr.bf16.mxu0 %v2995_v31 }
  0xdc   : > { %2453 = vmatpush3.bf16.msra.mxu0 %v2759_v42 }
  0xdd   : > { %2454 = vmatprep.subr.bf16.mxu0 %v2995_v31 }
  0xdf   : > { %1047 = vmatmul.mubr.bf16.gmra.mxu0 %v2726_v53 }
  0xe0   : > { %2149 = vmatprep.mubr.msk.bf16.mxu0 %vm954_vm0, %v2727_v54  ;;  %2455 = vmatpush3.bf16.msra.mxu0 %v2760_v44 }
  0xe1   : > { %2456 = vmatprep.subr.bf16.mxu0 %v2995_v31 }
  0xe4   : > { %2457 = vmatpush3.bf16.msra.mxu0 %v2761_v46  ;;  %v1143_v46 = vld [vmem:[%s3289_s22 + $0x38] sm:$0xff] }
  0xe5   : > { %2458 = vmatprep.subr.bf16.mxu0 %v2995_v31 }
  0xe7   : > { %1055 = vmatmul.mubr.bf16.gmra.mxu0 %v2729_v55 }
  0xe8   : > { %2150 = vmatprep.mubr.msk.bf16.mxu0 %vm954_vm0, %v2730_v56  ;;  %2459 = vmatpush3.bf16.msra.mxu0 %v2762_v49  ;;  %v1170_v49 = vmul.f32 %v3292_v12, %v1142_v45  ;;  %v1144_v56 = vld [vmem:[%s3289_s22 + $0x40] sm:$0xff] }
  0xe9   : > { %2460 = vmatprep.subr.bf16.mxu0 %v2995_v31 }
  0xec   : > { %2461 = vmatpush3.bf16.msra.mxu0 %v2763_v50  ;;  %v1171_v50 = vmul.f32 %v3292_v12, %v1143_v46 }
  0xef   : > { %1063 = vmatmul.mubr.bf16.gmra.mxu0 %v2732_v57  ;;  %v1145_v57 = vld [vmem:[%s3289_s22 + $0x48] sm:$0xff] }
  0xf0   : > { %2151 = vmatprep.mubr.msk.bf16.mxu0 %vm954_vm0, %v2733_v58 }
  0xf7   : > { %1071 = vmatmul.mubr.bf16.gmra.mxu0 %v2735_v59 }
  0xf8   : > { %2152 = vmatprep.mubr.msk.bf16.mxu0 %vm954_vm0, %v2736_v60  ;;  %v1172_v60 = vmul.f32 %v3292_v12, %v1144_v56  ;;  %v1155_v56 = vld [vmem:[%s3289_s22 + $0x98] sm:$0xff] }
  0xff   : > { %1079 = vmatmul.mubr.bf16.gmra.mxu0 %v2738_v61  ;;  %v1173_v61 = vmul.f32 %v3292_v12, %v1145_v57  ;;  %v2770_v57 = vld [vmem:[%s3201_s18 + $0x8] sm:$0xff]  }
 0x100   : > { %2153 = vmatprep.mubr.msk.bf16.mxu0 %vm954_vm0, %v2739_v62 }
 0x107   : > { %1087 = vmatmul.mubr.bf16.gmra.mxu0 %v2741_v63 }
 0x108   : > { %2154 = vmatprep.mubr.msk.bf16.mxu0 %vm954_vm0, %v2742_v0 }
 0x10f   : > { %1095 = vmatmul.mubr.bf16.gmra.mxu0 %v2744_v1 }
 0x110   : > { %2155 = vmatprep.mubr.msk.bf16.mxu0 %vm954_vm0, %v2745_v2 }
 0x117   : > { %1103 = vmatmul.mubr.bf16.gmra.mxu0 %v2747_v3  ;;  %v1146_v3 = vld [vmem:[%s3289_s22 + $0x50] sm:$0xff] }
 0x118   : > { %2156 = vmatprep.mubr.msk.bf16.mxu0 %vm954_vm0, %v2748_v4  ;;  %v1147_v4 = vld [vmem:[%s3289_s22 + $0x58] sm:$0xff]  ;;  %v1174_v7 = vmul.f32 %v3292_v12, %v1146_v3 }
 0x11f   : > { %1111 = vmatmul.mubr.bf16.gmra.mxu0 %v2750_v5 }
 0x120   : > { %2157 = vmatprep.mubr.msk.bf16.mxu0 %vm954_vm0, %v2751_v6 }
 0x127   : > { %1119 = vmatmul.mubr.bf16.gmra.mxu0 %v2753_v8  ;;  %v1175_v8 = vmul.f32 %v3292_v12, %v1147_v4  ;;  %v1156_v4 = vld [vmem:[%s3289_s22 + $0xa0] sm:$0xff] }
 0x128   : > { %2158 = vmatprep.mubr.msk.bf16.mxu0 %vm954_vm0, %v2132_v9 }
 0x12f   : > { %1127 = vmatmul.mubr.bf16.gmra.mxu0 %v2131_v10 }
 0x130   : > { %2462 = vmatprep.mubr.msk.bf16.mxu0 %vm2996_vm2, %v2995_v31 }
 0x18f   : > { %v1032_v14 = vpop.f32.mrf.mxu0 }
 0x190   : > { %v1189_v19 = vadd.f32 %v1164_v15, %v1032_v14  ;;  %v1148_v15 = vld [vmem:[%s3289_s22 + $0x60] sm:$0xff] }
 0x191   : > { %v1034_v17 = vpop.f32.mrf.mxu0 }
 0x192   : > { %v2764_v17 = vld [vmem:[%s3201_s18 + $0x38] sm:$0xff]  }
 0x193   : > { %v1035_v18 = vpop.f32.mrf.mxu0 }
 0x194   : > { %v1190_v20 = vadd.f32 %v1165_v16, %v1035_v18  ;;  %v1149_v16 = vld [vmem:[%s3289_s22 + $0x68] sm:$0xff] }
 0x195   : > { %v1037_v21 = vpop.f32.mrf.mxu0 }
 0x196   : > { %v1214_v24 = vpack.c.bf16 %v1190_v20, %v1189_v19  ;;  %v1176_v20 = vmul.f32 %v3292_v12, %v1148_v15  ;;  %v1177_v21 = vmul.f32 %v3292_v12, %v1149_v16  ;;  %v1158_v16 = vld [vmem:[%s3289_s22 + $0xb0] sm:$0xff] }
 0x197   : > { %v1040_v25 = vpop.f32.mrf.mxu0 }
 0x198   : > { %2463 = vmatmul.mubr.bf16.vlgmr.msra.gmra.mxu0 %v1214_v24  ;;  %v1191_v30 = vadd.f32 %v1166_v26, %v1040_v25 }
 0x199   : > { %v1042_v28 = vpop.f32.mrf.mxu0  ;;  %2466 = vmatprep.mubr.msk.bf16.mxu0 %vm2996_vm2, %v2995_v31 }
 0x19a   : > { %v1150_v28 = vld [vmem:[%s3289_s22 + $0x70] sm:$0xff] }
 0x19b   : > { %v1043_v29 = vpop.f32.mrf.mxu0  ;;  %v1178_v34 = vmul.f32 %v3292_v12, %v1150_v28 }
 0x19c   : > { %v1192_v32 = vadd.f32 %v1167_v27, %v1043_v29  ;;  %v1151_v29 = vld [vmem:[%s3289_s22 + $0x78] sm:$0xff] }
 0x19d   : > { %v1045_v33 = vpop.f32.mrf.mxu0  ;;  %v1179_v35 = vmul.f32 %v3292_v12, %v1151_v29 }
 0x19e   : > { %v1215_v36 = vpack.c.bf16 %v1192_v32, %v1191_v30  ;;  %v2766_v30 = vld [vmem:[%s3201_s18 + $0x28] sm:$0xff]  }
 0x19f   : > { %v1048_v37 = vpop.f32.mrf.mxu0 }
 0x1a0   : > { %2467 = vmatmul.mubr.bf16.gmra.mxu0 %v1215_v36  ;;  %v1193_v42 = vadd.f32 %v1168_v38, %v1048_v37  ;;  %v2767_v37 = vld [vmem:[%s3201_s18 + $0x20] sm:$0xff]  }
 0x1a1   : > { %v1050_v40 = vpop.f32.mrf.mxu0  ;;  %2470 = vmatprep.mubr.msk.bf16.mxu0 %vm2996_vm2, %v2995_v31 }
 0x1a3   : > { %v1051_v41 = vpop.f32.mrf.mxu0 }
 0x1a4   : > { %v1194_v43 = vadd.f32 %v1169_v39, %v1051_v41 }
 0x1a5   : > { %v1053_v44 = vpop.f32.mrf.mxu0 }
 0x1a6   : > { %v1216_v47 = vpack.c.bf16 %v1194_v43, %v1193_v42  ;;  %v1152_v42 = vld [vmem:[%s3289_s22 + $0x80] sm:$0xff]  ;;  %v1153_v43 = vld [vmem:[%s3289_s22 + $0x88] sm:$0xff] }
 0x1a7   : > { %v1056_v48 = vpop.f32.mrf.mxu0  ;;  %v2768_v44 = vld [vmem:[%s3201_s18 + $0x18] sm:$0xff]  }
 0x1a8   : > { %2471 = vmatmul.mubr.bf16.gmra.mxu0 %v1216_v47  ;;  %v1195_v53 = vadd.f32 %v1170_v49, %v1056_v48  ;;  %v1180_v47 = vmul.f32 %v3292_v12, %v1152_v42  ;;  %v1181_v48 = vmul.f32 %v3292_v12, %v1153_v43 }
 0x1a9   : > { %v1058_v51 = vpop.f32.mrf.mxu0  ;;  %2474 = vmatprep.mubr.msk.bf16.mxu0 %vm2996_vm2, %v2995_v31 }
 0x1ab   : > { %v1059_v52 = vpop.f32.mrf.mxu0 }
 0x1ac   : > { %v1196_v54 = vadd.f32 %v1171_v50, %v1059_v52  ;;  %v2769_v50 = vld [vmem:[%s3201_s18 + $0x10] sm:$0xff]  }
 0x1ad   : > { %v1061_v55 = vpop.f32.mrf.mxu0 }
 0x1ae   : > { %v1217_v58 = vpack.c.bf16 %v1196_v54, %v1195_v53  ;;  %v1154_v55 = vld [vmem:[%s3289_s22 + $0x90] sm:$0xff] }
 0x1af   : > { %v1064_v59 = vpop.f32.mrf.mxu0 }
 0x1b0   : > { %2475 = vmatmul.mubr.bf16.gmra.mxu0 %v1217_v58  ;;  %v1197_v0 = vadd.f32 %v1172_v60, %v1064_v59  ;;  %v1182_v60 = vmul.f32 %v3292_v12, %v1154_v55 }
 0x1b1   : > { %v1066_v62 = vpop.f32.mrf.mxu0  ;;  %2478 = vmatprep.mubr.msk.bf16.mxu0 %vm2996_vm2, %v2995_v31 }
 0x1b3   : > { %v1067_v63 = vpop.f32.mrf.mxu0 }
 0x1b4   : > { %v1198_v1 = vadd.f32 %v1173_v61, %v1067_v63  ;;  %v1183_v61 = vmul.f32 %v3292_v12, %v1155_v56 }
 0x1b5   : > { %v1069_v2 = vpop.f32.mrf.mxu0 }
 0x1b6   : > { %v1218_v5 = vpack.c.bf16 %v1198_v1, %v1197_v0  ;;  %v2771_v0 = vld [vmem:[%s3201_s18] sm:$0xff]  }
 0x1b7   : > { %v1072_v6 = vpop.f32.mrf.mxu0 }
 0x1b8   : > { %2479 = vmatmul.mubr.bf16.gmra.mxu0 %v1218_v5  ;;  %v1199_v11 = vadd.f32 %v1174_v7, %v1072_v6  ;;  %v1157_v5 = vld [vmem:[%s3289_s22 + $0xa8] sm:$0xff] }
 0x1b9   : > { %v1074_v9 = vpop.f32.mrf.mxu0 }
 0x1ba   : > { %v1185_v9 = vmul.f32 %v3292_v12, %v1157_v5 }
 0x1bb   : > { %v1075_v10 = vpop.f32.mrf.mxu0 }
 0x1bc   : > { %v1200_v13 = vadd.f32 %v1175_v8, %v1075_v10  ;;  %v1184_v8 = vmul.f32 %v3292_v12, %v1156_v4 }
 0x1bd   : > { %v1077_v14 = vpop.f32.mrf.mxu0 }
 0x1be   : > { %v1219_v18 = vpack.c.bf16 %v1200_v13, %v1199_v11 }
 0x1bf   : > { %v1080_v19 = vpop.f32.mrf.mxu0 }
 0x1c0   : > { %2483 = vmatmul.mubr.bf16.vlgmr.msra.gmra.mxu1 %v1219_v18  ;;  %v1201_v25 = vadd.f32 %v1176_v20, %v1080_v19  ;;  %v1186_v20 = vmul.f32 %v3292_v12, %v1158_v16 }
 0x1c1   : > { %v1082_v22 = vpop.f32.mrf.mxu0  ;;  %2486 = vmatprep.mubr.msk.bf16.mxu1 %vm2996_vm2, %v2995_v31  ;;  %2515 = vmatpush3.bf16.msra.mxu1 %v2764_v17  ;;  %v1159_v17 = vld [vmem:[%s3289_s22 + $0xb8] sm:$0xff] }
 0x1c2   : > { %2516 = vmatprep.subr.bf16.mxu1 %v2995_v31 }
 0x1c3   : > { %v1083_v24 = vpop.f32.mrf.mxu0 }
 0x1c4   : > { %v1202_v26 = vadd.f32 %v1177_v21, %v1083_v24  ;;  %v1187_v21 = vmul.f32 %v3292_v12, %v1159_v17 }
 0x1c5   : > { %v1085_v27 = vpop.f32.mrf.mxu0  ;;  %2517 = vmatpush3.bf16.msra.mxu1 %v2765_v23  ;;  %v1160_v23 = vld [vmem:[%s3289_s22 + $0xc0] sm:$0xff] }
 0x1c6   : > { %v1220_v32 = vpack.c.bf16 %v1202_v26, %v1201_v25  ;;  %2518 = vmatprep.subr.bf16.mxu1 %v2995_v31  ;;  %v1188_v27 = vmul.f32 %v3292_v12, %v1160_v23  ;;  %v3387_v12 = vld [vmem:[%s397_s24] ss:$0 sm:$0xff] }
 0x1c7   : > { %v1088_v33 = vpop.f32.mrf.mxu0 }
 0x1c8   : > { %2487 = vmatmul.mubr.bf16.gmra.mxu1 %v1220_v32  ;;  %v1203_v39 = vadd.f32 %v1178_v34, %v1088_v33 }
 0x1c9   : > { %v1090_v36 = vpop.f32.mrf.mxu0  ;;  %2490 = vmatprep.mubr.msk.bf16.mxu1 %vm2996_vm2, %v2995_v31  ;;  %2519 = vmatpush3.bf16.msra.mxu1 %v2766_v30 }
 0x1ca   : > { %2520 = vmatprep.subr.bf16.mxu1 %v2995_v31 }
 0x1cb   : > { %v1091_v38 = vpop.f32.mrf.mxu0 }
 0x1cc   : > { %v1204_v40 = vadd.f32 %v1179_v35, %v1091_v38 }
 0x1cd   : > { %v1093_v41 = vpop.f32.mrf.mxu0  ;;  %2521 = vmatpush3.bf16.msra.mxu1 %v2767_v37 }
 0x1ce   : > { %v1221_v45 = vpack.c.bf16 %v1204_v40, %v1203_v39  ;;  %2522 = vmatprep.subr.bf16.mxu1 %v2995_v31 }
 0x1cf   : > { %v1096_v46 = vpop.f32.mrf.mxu0 }
 0x1d0   : > { %2491 = vmatmul.mubr.bf16.gmra.mxu1 %v1221_v45  ;;  %v1205_v52 = vadd.f32 %v1180_v47, %v1096_v46 }
 0x1d1   : > { %v1098_v49 = vpop.f32.mrf.mxu0  ;;  %2494 = vmatprep.mubr.msk.bf16.mxu1 %vm2996_vm2, %v2995_v31  ;;  %2523 = vmatpush3.bf16.msra.mxu1 %v2768_v44 }
 0x1d2   : > { %2524 = vmatprep.subr.bf16.mxu1 %v2995_v31 }
 0x1d3   : > { %v1099_v51 = vpop.f32.mrf.mxu0 }
 0x1d4   : > { %v1206_v53 = vadd.f32 %v1181_v48, %v1099_v51 }
 0x1d5   : > { %v1101_v54 = vpop.f32.mrf.mxu0  ;;  %2525 = vmatpush3.bf16.msra.mxu1 %v2769_v50 }
 0x1d6   : > { %v1222_v58 = vpack.c.bf16 %v1206_v53, %v1205_v52  ;;  %2526 = vmatprep.subr.bf16.mxu1 %v2995_v31 }
 0x1d7   : > { %v1104_v59 = vpop.f32.mrf.mxu0 }
 0x1d8   : > { %2495 = vmatmul.mubr.bf16.gmra.mxu1 %v1222_v58  ;;  %v1207_v1 = vadd.f32 %v1182_v60, %v1104_v59 }
 0x1d9   : > { %v1106_v62 = vpop.f32.mrf.mxu0  ;;  %2498 = vmatprep.mubr.msk.bf16.mxu1 %vm2996_vm2, %v2995_v31  ;;  %2527 = vmatpush3.bf16.msra.mxu1 %v2770_v57 }
 0x1da   : > { %2528 = vmatprep.subr.bf16.mxu1 %v2995_v31 }
 0x1db   : > { %v1107_v63 = vpop.f32.mrf.mxu0 }
 0x1dc   : > { %v1208_v2 = vadd.f32 %v1183_v61, %v1107_v63 }
 0x1dd   : > { %v1109_v3 = vpop.f32.mrf.mxu0  ;;  %2529 = vmatpush3.bf16.msra.mxu1 %v2771_v0 }
 0x1de   : > { %v1223_v6 = vpack.c.bf16 %v1208_v2, %v1207_v1 }
 0x1df   : > { %v1112_v7 = vpop.f32.mrf.mxu0 }
 0x1e0   : > { %2499 = vmatmul.mubr.bf16.gmra.mxu1 %v1223_v6  ;;  %v1209_v13 = vadd.f32 %v1184_v8, %v1112_v7 }
 0x1e1   : > { %v1114_v10 = vpop.f32.mrf.mxu0  ;;  %2502 = vmatprep.mubr.msk.bf16.mxu1 %vm2996_vm2, %v2995_v31 }
 0x1e3   : > { %v1115_v11 = vpop.f32.mrf.mxu0 }
 0x1e4   : > { %v1210_v14 = vadd.f32 %v1185_v9, %v1115_v11 }
 0x1e5   : > { %v1117_v15 = vpop.f32.mrf.mxu0 }
 0x1e6   : > { %v1224_v18 = vpack.c.bf16 %v1210_v14, %v1209_v13 }
 0x1e7   : > { %v1120_v19 = vpop.f32.mrf.mxu0 }
 0x1e8   : > { %2503 = vmatmul.mubr.bf16.gmra.mxu1 %v1224_v18  ;;  %v1211_v25 = vadd.f32 %v1186_v20, %v1120_v19 }
 0x1e9   : > { %v1122_v22 = vpop.f32.mrf.mxu0  ;;  %2506 = vmatprep.mubr.msk.bf16.mxu1 %vm2996_vm2, %v2995_v31 }
 0x1eb   : > { %v1123_v24 = vpop.f32.mrf.mxu0 }
 0x1ec   : > { %v1212_v26 = vadd.f32 %v1187_v21, %v1123_v24 }
 0x1ed   : > { %v1125_v28 = vpop.f32.mrf.mxu0 }
 0x1ee   : > { %v1225_v29 = vpack.c.bf16 %v1212_v26, %v1211_v25 }
 0x1ef   : > { %v1128_v30 = vpop.f32.mrf.mxu0 }
 0x1f0   : > { %2507 = vmatmul.mubr.bf16.gmra.mxu1 %v1225_v29  ;;  %v1213_v32 = vadd.f32 %v1188_v27, %v1128_v30 }
 0x1f1   : > { %v1130_v33 = vpop.f32.mrf.mxu0  ;;  %2510 = vmatprep.mubr.msk.bf16.mxu1 %vm2996_vm2, %v2995_v31 }
 0x1f2   : > { %v1226_v35 = vpack.c.bf16 %v1213_v32, %v1213_v32 }
 0x1f3   : > { %v1131_v34 = vpop.f32.mrf.mxu0 }
 0x1f5   : > { %v1132_v36 = vpop.f32.mrf.mxu0 }
 0x1f8   : > { %2511 = vmatmul.mubr.bf16.gmra.mxu1 %v1226_v35 }
 0x1f9   : > { %2530 = vmatprep.mubr.msk.bf16.mxu1 %vm2996_vm2, %v2995_v31 }
 0x258   : > { %v1332_v37 = vpop.f32.mrf.mxu0 }
 0x259   : > { %v1333_v39 = vadd.f32 %v3387_v12, %v1332_v37 }
 0x25a   : > { %v2464_v38 = vpop.f32.mrf.mxu0 }
 0x25b   : > { %v1434_v43 = vmax.f32 %v1333_v39, 0.0 }
 0x25c   : > { %v1335_v40 = vpop.f32.mrf.mxu0 }
 0x25d   : > { %v1336_v41 = vadd.f32 %v3387_v12, %v1335_v40 }
 0x25e   : > { %v2465_v42 = vpop.f32.mrf.mxu0 }
 0x25f   : > { %v1435_v44 = vmax.f32 %v1336_v41, 0.0 }
 0x260   : > { %v1340_v45 = vpop.f32.mrf.mxu0 }
 0x261   : > { %v1459_v46 = vpack.c.bf16 %v1435_v44, %v1434_v43  ;;  %v1341_v48 = vadd.f32 %v3387_v12, %v1340_v45 }
 0x262   : > { %v2468_v47 = vpop.f32.mrf.mxu0 }
 0x263   : > { %2531 = vmatmul.mubr.bf16.vlgmr.msra.gmra.mxu1 %v1459_v46  ;;  %v1436_v52 = vmax.f32 %v1341_v48, 0.0 }
 0x264   : > { %v1343_v49 = vpop.f32.mrf.mxu0  ;;  %2534 = vmatprep.mubr.msk.bf16.mxu1 %vm2996_vm2, %v2995_v31 }
 0x265   : > { %v1344_v50 = vadd.f32 %v3387_v12, %v1343_v49 }
 0x266   : > { %v2469_v51 = vpop.f32.mrf.mxu0 }
 0x267   : > { %v1437_v53 = vmax.f32 %v1344_v50, 0.0 }
 0x268   : > { %v1348_v54 = vpop.f32.mrf.mxu0 }
 0x269   : > { %v1460_v55 = vpack.c.bf16 %v1437_v53, %v1436_v52  ;;  %v1349_v57 = vadd.f32 %v3387_v12, %v1348_v54 }
 0x26a   : > { %v2472_v56 = vpop.f32.mrf.mxu0 }
 0x26b   : > { %2535 = vmatmul.mubr.bf16.gmra.mxu1 %v1460_v55  ;;  %v1438_v61 = vmax.f32 %v1349_v57, 0.0 }
 0x26c   : > { %v1351_v58 = vpop.f32.mrf.mxu0  ;;  %2538 = vmatprep.mubr.msk.bf16.mxu1 %vm2996_vm2, %v2995_v31 }
 0x26d   : > { %v1352_v59 = vadd.f32 %v3387_v12, %v1351_v58 }
 0x26e   : > { %v2473_v60 = vpop.f32.mrf.mxu0 }
 0x26f   : > { %v1439_v62 = vmax.f32 %v1352_v59, 0.0 }
 0x270   : > { %v1356_v63 = vpop.f32.mrf.mxu0 }
 0x271   : > { %v1461_v0 = vpack.c.bf16 %v1439_v62, %v1438_v61  ;;  %v1357_v2 = vadd.f32 %v3387_v12, %v1356_v63 }
 0x272   : > { %v2476_v1 = vpop.f32.mrf.mxu0 }
 0x273   : > { %2539 = vmatmul.mubr.bf16.gmra.mxu1 %v1461_v0  ;;  %v1440_v6 = vmax.f32 %v1357_v2, 0.0 }
 0x274   : > { %v1359_v3 = vpop.f32.mrf.mxu0  ;;  %2542 = vmatprep.mubr.msk.bf16.mxu1 %vm2996_vm2, %v2995_v31 }
 0x275   : > { %v1360_v4 = vadd.f32 %v3387_v12, %v1359_v3 }
 0x276   : > { %v2477_v5 = vpop.f32.mrf.mxu0 }
 0x277   : > { %v1441_v7 = vmax.f32 %v1360_v4, 0.0 }
 0x278   : > { %v1364_v8 = vpop.f32.mrf.mxu0 }
 0x279   : > { %v1462_v9 = vpack.c.bf16 %v1441_v7, %v1440_v6  ;;  %v1365_v11 = vadd.f32 %v3387_v12, %v1364_v8 }
 0x27a   : > { %v2480_v10 = vpop.f32.mrf.mxu0 }
 0x27b   : > { %2543 = vmatmul.mubr.bf16.gmra.mxu1 %v1462_v9  ;;  %v1442_v16 = vmax.f32 %v1365_v11, 0.0 }
 0x27c   : > { %v1367_v13 = vpop.f32.mrf.mxu0  ;;  %2546 = vmatprep.mubr.msk.bf16.mxu1 %vm2996_vm2, %v2995_v31 }
 0x27d   : > { %v1368_v14 = vadd.f32 %v3387_v12, %v1367_v13 }
 0x27e   : > { %v2481_v15 = vpop.f32.mrf.mxu0 }
 0x27f   : > { %v1443_v17 = vmax.f32 %v1368_v14, 0.0 }
 0x280   : > { %v1372_v18 = vpop.f32.mrf.mxu1 }
 0x281   : > { %v1463_v19 = vpack.c.bf16 %v1443_v17, %v1442_v16  ;;  %v1373_v21 = vadd.f32 %v3387_v12, %v1372_v18 }
 0x282   : > { %v2484_v20 = vpop.f32.mrf.mxu1 }
 0x283   : > { %2547 = vmatmul.mubr.bf16.gmra.mxu1 %v1463_v19  ;;  %v1444_v25 = vmax.f32 %v1373_v21, 0.0 }
 0x284   : > { %v1375_v22 = vpop.f32.mrf.mxu1  ;;  %2550 = vmatprep.mubr.msk.bf16.mxu1 %vm2996_vm2, %v2995_v31 }
 0x285   : > { %v1376_v23 = vadd.f32 %v3387_v12, %v1375_v22 }
 0x286   : > { %v2485_v24 = vpop.f32.mrf.mxu1 }
 0x287   : > { %v1445_v26 = vmax.f32 %v1376_v23, 0.0 }
 0x288   : > { %v1380_v27 = vpop.f32.mrf.mxu1 }
 0x289   : > { %v1464_v28 = vpack.c.bf16 %v1445_v26, %v1444_v25  ;;  %v1381_v30 = vadd.f32 %v3387_v12, %v1380_v27  ;;  %v3443_v27 = vld [vmem:[%s400_s3] ss:$0 sm:$0xff]  ;;  %s3535_s3 = scalar_lea.vmem (!%p2177_p2), [#allocation2], %s429_s15 }
 0x28a   : > { %v2488_v29 = vpop.f32.mrf.mxu1 }
 0x28b   : > { %2551 = vmatmul.mubr.bf16.gmra.mxu1 %v1464_v28  ;;  %v1446_v35 = vmax.f32 %v1381_v30, 0.0 }
 0x28c   : > { %v1383_v32 = vpop.f32.mrf.mxu1  ;;  %2554 = vmatprep.mubr.msk.bf16.mxu1 %vm2996_vm2, %v2995_v31 }
 0x28d   : > { %v1384_v33 = vadd.f32 %v3387_v12, %v1383_v32 }
 0x28e   : > { %v2489_v34 = vpop.f32.mrf.mxu1 }
 0x28f   : > { %v1447_v36 = vmax.f32 %v1384_v33, 0.0 }
 0x290   : > { %v1388_v37 = vpop.f32.mrf.mxu1 }
 0x291   : > { %v1465_v38 = vpack.c.bf16 %v1447_v36, %v1446_v35  ;;  %v1389_v40 = vadd.f32 %v3387_v12, %v1388_v37 }
 0x292   : > { %v2492_v39 = vpop.f32.mrf.mxu1 }
 0x293   : > { %2555 = vmatmul.mubr.bf16.gmra.mxu1 %v1465_v38  ;;  %v1448_v44 = vmax.f32 %v1389_v40, 0.0 }
 0x294   : > { %v1391_v41 = vpop.f32.mrf.mxu1  ;;  %2558 = vmatprep.mubr.msk.bf16.mxu1 %vm2996_vm2, %v2995_v31 }
 0x295   : > { %v1392_v42 = vadd.f32 %v3387_v12, %v1391_v41 }
 0x296   : > { %v2493_v43 = vpop.f32.mrf.mxu1 }
 0x297   : > { %v1449_v45 = vmax.f32 %v1392_v42, 0.0 }
 0x298   : > { %v1396_v46 = vpop.f32.mrf.mxu1 }
 0x299   : > { %v1466_v47 = vpack.c.bf16 %v1449_v45, %v1448_v44  ;;  %v1397_v49 = vadd.f32 %v3387_v12, %v1396_v46 }
 0x29a   : > { %v2496_v48 = vpop.f32.mrf.mxu1 }
 0x29b   : > { %2559 = vmatmul.mubr.bf16.gmra.mxu1 %v1466_v47  ;;  %v1450_v53 = vmax.f32 %v1397_v49, 0.0 }
 0x29c   : > { %v1399_v50 = vpop.f32.mrf.mxu1  ;;  %2562 = vmatprep.mubr.msk.bf16.mxu1 %vm2996_vm2, %v2995_v31 }
 0x29d   : > { %v1400_v51 = vadd.f32 %v3387_v12, %v1399_v50 }
 0x29e   : > { %v2497_v52 = vpop.f32.mrf.mxu1 }
 0x29f   : > { %v1451_v54 = vmax.f32 %v1400_v51, 0.0 }
 0x2a0   : > { %v1404_v55 = vpop.f32.mrf.mxu1 }
 0x2a1   : > { %v1467_v56 = vpack.c.bf16 %v1451_v54, %v1450_v53  ;;  %v1405_v58 = vadd.f32 %v3387_v12, %v1404_v55 }
 0x2a2   : > { %v2500_v57 = vpop.f32.mrf.mxu1 }
 0x2a3   : > { %2563 = vmatmul.mubr.bf16.gmra.mxu1 %v1467_v56  ;;  %v1452_v62 = vmax.f32 %v1405_v58, 0.0 }
 0x2a4   : > { %v1407_v59 = vpop.f32.mrf.mxu1  ;;  %2566 = vmatprep.mubr.msk.bf16.mxu1 %vm2996_vm2, %v2995_v31 }
 0x2a5   : > { %v1408_v60 = vadd.f32 %v3387_v12, %v1407_v59 }
 0x2a6   : > { %v2501_v61 = vpop.f32.mrf.mxu1 }
 0x2a7   : > { %v1453_v63 = vmax.f32 %v1408_v60, 0.0 }
 0x2a8   : > { %v1412_v0 = vpop.f32.mrf.mxu1 }
 0x2a9   : > { %v1468_v1 = vpack.c.bf16 %v1453_v63, %v1452_v62  ;;  %v1413_v3 = vadd.f32 %v3387_v12, %v1412_v0 }
 0x2aa   : > { %v2504_v2 = vpop.f32.mrf.mxu1 }
 0x2ab   : > { %2567 = vmatmul.mubr.bf16.gmra.mxu1 %v1468_v1  ;;  %v1454_v7 = vmax.f32 %v1413_v3, 0.0 }
 0x2ac   : > { %v1415_v4 = vpop.f32.mrf.mxu1  ;;  %2570 = vmatprep.mubr.msk.bf16.mxu1 %vm2996_vm2, %v2995_v31 }
 0x2ad   : > { %v1416_v5 = vadd.f32 %v3387_v12, %v1415_v4 }
 0x2ae   : > { %v2505_v6 = vpop.f32.mrf.mxu1 }
 0x2af   : > { %v1455_v8 = vmax.f32 %v1416_v5, 0.0 }
 0x2b0   : > { %v1420_v9 = vpop.f32.mrf.mxu1 }
 0x2b1   : > { %v1469_v10 = vpack.c.bf16 %v1455_v8, %v1454_v7  ;;  %v1421_v13 = vadd.f32 %v3387_v12, %v1420_v9 }
 0x2b2   : > { %v2508_v11 = vpop.f32.mrf.mxu1 }
 0x2b3   : > { %2571 = vmatmul.mubr.bf16.gmra.mxu1 %v1469_v10  ;;  %v1456_v17 = vmax.f32 %v1421_v13, 0.0 }
 0x2b4   : > { %v1423_v14 = vpop.f32.mrf.mxu1  ;;  %2574 = vmatprep.mubr.msk.bf16.mxu1 %vm2996_vm2, %v2995_v31 }
 0x2b5   : > { %v1424_v15 = vadd.f32 %v3387_v12, %v1423_v14 }
 0x2b6   : > { %v2509_v16 = vpop.f32.mrf.mxu1 }
 0x2b7   : > { %v1457_v18 = vmax.f32 %v1424_v15, 0.0 }
 0x2b8   : > { %v1428_v19 = vpop.f32.mrf.mxu1 }
 0x2b9   : > { %v1470_v20 = vpack.c.bf16 %v1457_v18, %v1456_v17  ;;  %v1429_v21 = vadd.f32 %v3387_v12, %v1428_v19 }
 0x2ba   : > { %v2512_v22 = vpop.f32.mrf.mxu1 }
 0x2bb   : > { %v1458_v23 = vmax.f32 %v1429_v21, 0.0  ;;  %2575 = vmatmul.mubr.bf16.gmra.mxu1 %v1470_v20 }
 0x2bc   : > { %v1431_v24 = vpop.f32.mrf.mxu1  ;;  %2578 = vmatprep.mubr.msk.bf16.mxu1 %vm2996_vm2, %v2995_v31 }
 0x2bd   : > { %v1471_v26 = vpack.c.bf16 %v1458_v23, %v1458_v23 }
 0x2be   : > { %v2513_v25 = vpop.f32.mrf.mxu1 }
 0x2c3   : > { %2579 = vmatmul.mubr.bf16.gmra.mxu1 %v1471_v26 }
 0x323   : > { %v1577_v28 = vpop.f32.mrf.mxu1 }
 0x324   : > { %v3446_v29 = vadd.f32 %v3443_v27, %v1577_v28 }
 0x325   : > { %v2532_v12 = vpop.f32.mrf.mxu1 }
 0x327   : > { %v1580_v30 = vpop.f32.mrf.mxu1 }
 0x328   : > { %v3449_v32 = vadd.f32 %v3443_v27, %v1580_v30 }
 0x329   : > { %v2533_v33 = vpop.f32.mrf.mxu1 }
 0x32b   : > { %v1585_v31 = vpop.f32.mrf.mxu1 }
 0x32c   : > { %v3452_v34 = vadd.f32 %v3443_v27, %v1585_v31 }
 0x32d   : > { %v2536_v35 = vpop.f32.mrf.mxu1 }
 0x32f   : > { %v1588_v36 = vpop.f32.mrf.mxu1 }
 0x330   : > { %v3455_v37 = vadd.f32 %v3443_v27, %v1588_v36 }
 0x331   : > { %v2537_v38 = vpop.f32.mrf.mxu1 }
 0x333   : > { %v1593_v39 = vpop.f32.mrf.mxu1 }
 0x334   : > { %v3458_v40 = vadd.f32 %v3443_v27, %v1593_v39 }
 0x335   : > { %v2540_v41 = vpop.f32.mrf.mxu1 }
 0x337   : > { %v1596_v42 = vpop.f32.mrf.mxu1 }
 0x338   : > { %v3461_v43 = vadd.f32 %v3443_v27, %v1596_v42 }
 0x339   : > { %v2541_v44 = vpop.f32.mrf.mxu1 }
 0x33b   : > { %v1601_v45 = vpop.f32.mrf.mxu1 }
 0x33c   : > { %v3464_v46 = vadd.f32 %v3443_v27, %v1601_v45 }
 0x33d   : > { %v2544_v47 = vpop.f32.mrf.mxu1 }
 0x33f   : > { %v1604_v48 = vpop.f32.mrf.mxu1 }
 0x340   : > { %v3467_v49 = vadd.f32 %v3443_v27, %v1604_v48 }
 0x341   : > { %v2545_v50 = vpop.f32.mrf.mxu1 }
 0x343   : > { %v1609_v51 = vpop.f32.mrf.mxu1 }
 0x344   : > { %v3470_v52 = vadd.f32 %v3443_v27, %v1609_v51 }
 0x345   : > { %v2548_v53 = vpop.f32.mrf.mxu1 }
 0x347   : > { %v1612_v54 = vpop.f32.mrf.mxu1 }
 0x348   : > { %v3473_v55 = vadd.f32 %v3443_v27, %v1612_v54 }
 0x349   : > { %v2549_v56 = vpop.f32.mrf.mxu1 }
 0x34b   : > { %v1617_v57 = vpop.f32.mrf.mxu1 }
 0x34c   : > { %v3476_v58 = vadd.f32 %v3443_v27, %v1617_v57 }
 0x34d   : > { %v2552_v59 = vpop.f32.mrf.mxu1 }
 0x34f   : > { %v1620_v60 = vpop.f32.mrf.mxu1 }
 0x350   : > { %v3479_v61 = vadd.f32 %v3443_v27, %v1620_v60 }
 0x351   : > { %v2553_v62 = vpop.f32.mrf.mxu1 }
 0x353   : > { %v1625_v63 = vpop.f32.mrf.mxu1 }
 0x354   : > { %v3482_v0 = vadd.f32 %v3443_v27, %v1625_v63 }
 0x355   : > { %v2556_v1 = vpop.f32.mrf.mxu1 }
 0x357   : > { %v1628_v2 = vpop.f32.mrf.mxu1 }
 0x358   : > { %v3485_v3 = vadd.f32 %v3443_v27, %v1628_v2 }
 0x359   : > { %v2557_v4 = vpop.f32.mrf.mxu1 }
 0x35b   : > { %v1633_v5 = vpop.f32.mrf.mxu1 }
 0x35c   : > { %v3488_v6 = vadd.f32 %v3443_v27, %v1633_v5 }
 0x35d   : > { %v2560_v7 = vpop.f32.mrf.mxu1 }
 0x35f   : > { %v1636_v8 = vpop.f32.mrf.mxu1 }
 0x360   : > { %v3491_v9 = vadd.f32 %v3443_v27, %v1636_v8 }
 0x361   : > { %v2561_v10 = vpop.f32.mrf.mxu1 }
 0x363   : > { %v1641_v11 = vpop.f32.mrf.mxu1 }
 0x364   : > { %v3494_v13 = vadd.f32 %v3443_v27, %v1641_v11 }
 0x365   : > { %v2564_v14 = vpop.f32.mrf.mxu1 }
 0x367   : > { %v1644_v15 = vpop.f32.mrf.mxu1 }
 0x368   : > { %v3497_v16 = vadd.f32 %v3443_v27, %v1644_v15 }
 0x369   : > { %v2565_v17 = vpop.f32.mrf.mxu1 }
 0x36b   : > { %v1649_v18 = vpop.f32.mrf.mxu1 }
 0x36c   : > { %v3500_v19 = vadd.f32 %v3443_v27, %v1649_v18 }
 0x36d   : > { %v2568_v20 = vpop.f32.mrf.mxu1 }
 0x36f   : > { %v1652_v21 = vpop.f32.mrf.mxu1 }
 0x370   : > { %v3503_v22 = vadd.f32 %v3443_v27, %v1652_v21 }
 0x371   : > { %v2569_v23 = vpop.f32.mrf.mxu1 }
 0x373   : > { %v1657_v24 = vpop.f32.mrf.mxu1 }
 0x374   : > { %v3506_v25 = vadd.f32 %v3443_v27, %v1657_v24 }
 0x375   : > { %v2572_v26 = vpop.f32.mrf.mxu1 }
 0x377   : > { %v1660_v28 = vpop.f32.mrf.mxu1 }
 0x378   : > { %v3509_v12 = vadd.f32 %v3443_v27, %v1660_v28 }
 0x379   : > { %v2573_v30 = vpop.f32.mrf.mxu1 }
 0x37b   : > { %v1665_v33 = vpop.f32.mrf.mxu1 }
 0x37c   : > { %v3512_v31 = vadd.f32 %v3443_v27, %v1665_v33 }
 0x37d   : > { %v2576_v35 = vpop.f32.mrf.mxu1 }
 0x37f   : > { %v1668_v36 = vpop.f32.mrf.mxu1 }
 0x380   : > { %v3515_v38 = vadd.f32 %v3443_v27, %v1668_v36 }
 0x381   : > { %v2577_v39 = vpop.f32.mrf.mxu1 }
 0x383   : > { %v1673_v41 = vpop.f32.mrf.mxu1 }
 0x384   : > { %v3518_v42 = vadd.f32 %v3443_v27, %v1673_v41 }
 0x385   : > { %v2580_v44 = vpop.f32.mrf.mxu1  ;;  %1682 = sbr.rel (%p2177_p2) target bundleno = 927 (0x39f), region = 111 }
 0x387   : > { %v1676_v45 = vpop.f32.mrf.mxu1 }
 0x389   : > { %v2581_v47 = vpop.f32.mrf.mxu1 }
 0x38a   : > { %v1684_v48 = vmax.f32 %v3446_v29, 0.0  ;;  %v1685_v50 = vmax.f32 %v3449_v32, 0.0  ;;  %v1686_v51 = vmax.f32 %v3452_v34, 0.0  ;;  %v1687_v53 = vmax.f32 %v3455_v37, 0.0 }
 0x38b   : > { %v1688_v27 = vmax.f32 %v3458_v40, 0.0  ;;  %v1689_v54 = vmax.f32 %v3461_v43, 0.0  ;;  %v1690_v56 = vmax.f32 %v3464_v46, 0.0  ;;  %v1691_v57 = vmax.f32 %v3467_v49, 0.0 }
 0x38c   : > { %1710 = vst [vmem:[%s3535_s3] sm:$0xff] %v1684_v48  ;;  %1711 = vst [vmem:[%s3535_s3 + $0x8] sm:$0xff] %v1685_v50  ;;  %v1692_v59 = vmax.f32 %v3470_v52, 0.0  ;;  %v1693_v60 = vmax.f32 %v3473_v55, 0.0  ;;  %v1694_v62 = vmax.f32 %v3476_v58, 0.0  ;;  %v1695_v63 = vmax.f32 %v3479_v61, 0.0 }
 0x38d   : > { %1712 = vst [vmem:[%s3535_s3 + $0x10] sm:$0xff] %v1686_v51  ;;  %1713 = vst [vmem:[%s3535_s3 + $0x18] sm:$0xff] %v1687_v53  ;;  %v1696_v1 = vmax.f32 %v3482_v0, 0.0  ;;  %v1697_v2 = vmax.f32 %v3485_v3, 0.0  ;;  %v1698_v4 = vmax.f32 %v3488_v6, 0.0  ;;  %v1699_v5 = vmax.f32 %v3491_v9, 0.0 }
 0x38e   : > { %1714 = vst [vmem:[%s3535_s3 + $0x20] sm:$0xff] %v1688_v27  ;;  %1715 = vst [vmem:[%s3535_s3 + $0x28] sm:$0xff] %v1689_v54  ;;  %v1700_v7 = vmax.f32 %v3494_v13, 0.0  ;;  %v1701_v8 = vmax.f32 %v3497_v16, 0.0  ;;  %v1702_v10 = vmax.f32 %v3500_v19, 0.0  ;;  %v1703_v11 = vmax.f32 %v3503_v22, 0.0 }
 0x38f   : > { %1716 = vst [vmem:[%s3535_s3 + $0x30] sm:$0xff] %v1690_v56  ;;  %1717 = vst [vmem:[%s3535_s3 + $0x38] sm:$0xff] %v1691_v57  ;;  %v1704_v14 = vmax.f32 %v3506_v25, 0.0  ;;  %v1705_v15 = vmax.f32 %v3509_v12, 0.0  ;;  %v1706_v17 = vmax.f32 %v3512_v31, 0.0  ;;  %v1707_v18 = vmax.f32 %v3515_v38, 0.0 }
 0x390   : > { %1718 = vst [vmem:[%s3535_s3 + $0x40] sm:$0xff] %v1692_v59  ;;  %1719 = vst [vmem:[%s3535_s3 + $0x48] sm:$0xff] %v1693_v60  ;;  %v1708_v20 = vmax.f32 %v3518_v42, 0.0  ;;  %v2325_v21 = vpack.c.bf16 %v1685_v50, %v1684_v48  ;;  %v2330_v23 = vpack.c.bf16 %v1687_v53, %v1686_v51  ;;  %v2335_v24 = vpack.c.bf16 %v1689_v54, %v1688_v27 }
 0x391   : > { %1720 = vst [vmem:[%s3535_s3 + $0x50] sm:$0xff] %v1694_v62  ;;  %1721 = vst [vmem:[%s3535_s3 + $0x58] sm:$0xff] %v1695_v63  ;;  %v2340_v26 = vpack.c.bf16 %v1691_v57, %v1690_v56  ;;  %v2345_v28 = vpack.c.bf16 %v1693_v60, %v1692_v59  ;;  %v2350_v30 = vpack.c.bf16 %v1695_v63, %v1694_v62 }
 0x392   : > { %1722 = vst [vmem:[%s3535_s3 + $0x60] sm:$0xff] %v1696_v1  ;;  %1723 = vst [vmem:[%s3535_s3 + $0x68] sm:$0xff] %v1697_v2  ;;  %v2355_v33 = vpack.c.bf16 %v1697_v2, %v1696_v1  ;;  %v2360_v35 = vpack.c.bf16 %v1699_v5, %v1698_v4  ;;  %v2365_v36 = vpack.c.bf16 %v1701_v8, %v1700_v7 }
 0x393   : > { %1724 = vst [vmem:[%s3535_s3 + $0x70] sm:$0xff] %v1698_v4  ;;  %1725 = vst [vmem:[%s3535_s3 + $0x78] sm:$0xff] %v1699_v5  ;;  %v2370_v39 = vpack.c.bf16 %v1703_v11, %v1702_v10  ;;  %v2375_v41 = vpack.c.bf16 %v1705_v15, %v1704_v14  ;;  %v2380_v44 = vpack.c.bf16 %v1707_v18, %v1706_v17 }
 0x394   : > { %1726 = vst [vmem:[%s3535_s3 + $0x80] sm:$0xff] %v1700_v7  ;;  %1727 = vst [vmem:[%s3535_s3 + $0x88] sm:$0xff] %v1701_v8  ;;  %v2261_v45 = vpack.c.bf16 %v1708_v20, %v1708_v20 }
 0x395   : > { %1728 = vst [vmem:[%s3535_s3 + $0x90] sm:$0xff] %v1702_v10  ;;  %1729 = vst [vmem:[%s3535_s3 + $0x98] sm:$0xff] %v1703_v11 }
 0x396   : > { %1730 = vst [vmem:[%s3535_s3 + $0xa0] sm:$0xff] %v1704_v14  ;;  %1731 = vst [vmem:[%s3535_s3 + $0xa8] sm:$0xff] %v1705_v15 }
 0x397   : > { %1732 = vst [vmem:[%s3535_s3 + $0xb0] sm:$0xff] %v1706_v17  ;;  %1733 = vst [vmem:[%s3535_s3 + $0xb8] sm:$0xff] %v1707_v18 }
 0x398   : > { %1734 = vst [vmem:[%s3535_s3 + $0xc0] sm:$0xff] %v1708_v20  ;;  %2326 = vst [vmem:[%s1839_s20] sm:$0xff] %v2325_v21  }
 0x399   : > { %2393 = vst [vmem:[%s1839_s20 + $0x8] sm:$0xff] %v2330_v23   ;;  %2394 = vst [vmem:[%s1839_s20 + $0x10] sm:$0xff] %v2335_v24  }
 0x39a   : > { %2395 = vst [vmem:[%s1839_s20 + $0x18] sm:$0xff] %v2340_v26   ;;  %2396 = vst [vmem:[%s1839_s20 + $0x20] sm:$0xff] %v2345_v28  }
 0x39b   : > { %2397 = vst [vmem:[%s1839_s20 + $0x28] sm:$0xff] %v2350_v30   ;;  %2398 = vst [vmem:[%s1839_s20 + $0x30] sm:$0xff] %v2355_v33  }
 0x39c   : > { %2399 = vst [vmem:[%s1839_s20 + $0x38] sm:$0xff] %v2360_v35   ;;  %2400 = vst [vmem:[%s1839_s20 + $0x40] sm:$0xff] %v2365_v36  }
 0x39d   : > { %2401 = vst [vmem:[%s1839_s20 + $0x48] sm:$0xff] %v2370_v39   ;;  %2402 = vst [vmem:[%s1839_s20 + $0x50] sm:$0xff] %v2375_v41  }
 0x39e   : > { %2403 = vst [vmem:[%s1839_s20 + $0x58] sm:$0xff] %v2380_v44   ;;  %1864 = vst [vmem:[%s1839_s20 + $0x60] sm:$0xf] %v2261_v45 }
 0x39f PF: > { %p2204_p5 = scmp.ne.s32.totalorder %s2975_s27, 2 }
 0x3a1   : > { %1868 = sbr.rel (%p2204_p5) target bundleno = 947 (0x3b3), region = 115 }
 0x3a6   : > { %1870 = vst [vmem:[#allocation13] sm:$0xff] %v3446_v29  ;;  %1871 = vst [vmem:[#allocation13 + $0x8] sm:$0xff] %v3449_v32 }
 0x3a7   : > { %1872 = vst [vmem:[#allocation13 + $0x10] sm:$0xff] %v3452_v34  ;;  %1873 = vst [vmem:[#allocation13 + $0x18] sm:$0xff] %v3455_v37 }
 0x3a8   : > { %1874 = vst [vmem:[#allocation13 + $0x20] sm:$0xff] %v3458_v40  ;;  %1875 = vst [vmem:[#allocation13 + $0x28] sm:$0xff] %v3461_v43 }
 0x3a9   : > { %1876 = vst [vmem:[#allocation13 + $0x30] sm:$0xff] %v3464_v46  ;;  %1877 = vst [vmem:[#allocation13 + $0x38] sm:$0xff] %v3467_v49 }
 0x3aa   : > { %1878 = vst [vmem:[#allocation13 + $0x40] sm:$0xff] %v3470_v52  ;;  %1879 = vst [vmem:[#allocation13 + $0x48] sm:$0xff] %v3473_v55 }
 0x3ab   : > { %1880 = vst [vmem:[#allocation13 + $0x50] sm:$0xff] %v3476_v58  ;;  %1881 = vst [vmem:[#allocation13 + $0x58] sm:$0xff] %v3479_v61 }
 0x3ac   : > { %1882 = vst [vmem:[#allocation13 + $0x60] sm:$0xff] %v3482_v0  ;;  %1883 = vst [vmem:[#allocation13 + $0x68] sm:$0xff] %v3485_v3 }
 0x3ad   : > { %1884 = vst [vmem:[#allocation13 + $0x70] sm:$0xff] %v3488_v6  ;;  %1885 = vst [vmem:[#allocation13 + $0x78] sm:$0xff] %v3491_v9 }
 0x3ae   : > { %1886 = vst [vmem:[#allocation13 + $0x80] sm:$0xff] %v3494_v13  ;;  %1887 = vst [vmem:[#allocation13 + $0x88] sm:$0xff] %v3497_v16 }
 0x3af   : > { %1888 = vst [vmem:[#allocation13 + $0x90] sm:$0xff] %v3500_v19  ;;  %1889 = vst [vmem:[#allocation13 + $0x98] sm:$0xff] %v3503_v22 }
 0x3b0   : > { %1890 = vst [vmem:[#allocation13 + $0xa0] sm:$0xff] %v3506_v25  ;;  %1891 = vst [vmem:[#allocation13 + $0xa8] sm:$0xff] %v3509_v12 }
 0x3b1   : > { %1892 = vst [vmem:[#allocation13 + $0xb0] sm:$0xff] %v3512_v31  ;;  %1893 = vst [vmem:[#allocation13 + $0xb8] sm:$0xff] %v3515_v38 }
 0x3b2   : > { %1894 = vst [vmem:[#allocation13 + $0xc0] sm:$0xff] %v3518_v42 }
 0x3b3 PF: > { %p2642_p11 = scmp.eq.s32.totalorder %s3069_s30, 2  ;;  %s2997_s27 = smov [#allocation13]  }
 0x3b4   : > { %s1901_s28 = sshll.u32 %s2997_s27, 4  ;;  %s1902_s28 = int_to_ptr.vmem [resolvable:$true] %s1901_s28 }
 0x3b5   : > { %s2891_s26 = scalar_lea.vmem %s1902_s28, 3200  ;;  %p2898_p4 = scmp.lt.s32.totalorder %s1902_s28, %s1902_s28 }
 0x3b6   : > { %p2892_p10 = scmp.ne.s32.totalorder %s1902_s28, %s2891_s26  ;;  %p2899_p12 = scmp.lt.s32.totalorder %s2891_s26, %s2891_s26 }
 0x3b8   : > { %p2893_p7 = pnand %p2892_p10, %p2642_p11  ;;  %p2900_p8 = por %p2899_p12, %p2898_p4 }
 0x3ba   : > { %p2894_p9 = pneg %p2893_p7 }
 0x3bc   : > { %p2901_p13 = pnand %p2900_p8, %p2894_p9 }
 0x3be   : > { %2904 = shalt.err (!%p2901_p13)
}
 0x3bf   : > { %s2998_s23 = smov 128   ;;  %s2999_s19 = smov 8  }
 0x3c0   : > { %s3674_s14 = sld [smem:[#allocation28_spill]] }
 0x3c6   : > { %2615 = dma.vmem_to_hbm [thread:$0]  (%p2642_p11), %s1902_s28, 3200, %s3674_s14, [#allocation6], %s2998_s23, %s2998_s23, %s2999_s19  }
 0x3c7   : > { %2958 = dma.done.wait (%p2642_p11), [#allocation6], 3200  }
 0x3c8   : > { %2960 = vsyncadd (%p2642_p11), [#allocation6], 4294964096 }
 0x3c9 PF: > { %s21_s29 = sadd.s32 1, %s2983_s29   ;;  %s3675_s15 = sld [smem:[#allocation22_spill]] }
 0x3ca   : > { %p18_p6 = scmp.ge.s32.totalorder %s21_s29, 5   ;;  %s3676_s26 = sld [smem:[#allocation25_spill]] }
 0x3cb   : > { %s3677_s27 = sld [smem:[#allocation23_spill]]  ;;  %s3679_s24 = smov %s2967_s25 }
 0x3cc   : > { %s3678_s28 = sld [smem:[#allocation24_spill]]  ;;  %20 = sbr.rel (!%p18_p6) target bundleno = 10 (0xa), region = 175 }
 0x3cf   : > { %s3680_s25 = smov %s3675_s15 }
 0x3d1   :  { %1917 = vsyncpa [#allocation5], 1 }
 0x3d2   :  { %1919 = vsyncpa [#allocation5 + $0x1], 1 }
 0x3d3   :  { %1920 = vsyncpa [#allocation10], 1 }
 0x3d4   :  { %1921 = vsyncpa [#allocation6], 1 }
 0x3d5   :  { %1923 = vsyncpa [#allocation6 + $0x1], 1 }
 0x3d6   :  { %1924 = vsyncpa [#allocation7], 1 }
 0x3d7   :  { %1926 = vsyncpa [#allocation7 + $0x1], 1 }

</bundles_post_ra>
